<compile_context>
chip_gen: v7x
topology: tpu7x:2x2x1
jax: 0.10.0
libtpu: 0.0.40
codegen_flags: <defaults>
</compile_context>

<pallas_src>
import functools

import jax
import jax.numpy as jnp
from jax.experimental import pallas as pl
from jax.experimental.pallas import tpu as pltpu


def mha_kernel(q_ref, k_ref, v_ref, wq_ref, wk_ref, wv_ref, wfc_ref,
               gamma_ref, beta_ref, o_ref, kh_sc, vh_sc,
               *, n_head, d_k, d_v, eps, exp_dtype):
    cdt = wq_ref.dtype
    len_k = k_ref.shape[1]
    len_v = v_ref.shape[1]
    tq = q_ref.shape[1]

    # --- K / V projections: once per batch element (first q tile only); results
    # --- stay resident in VMEM scratch across the "arbitrary" q-tile grid axis.
    @pl.when(pl.program_id(1) == 0)
    def _project_kv():
        xk = k_ref[0].astype(cdt)                                 # (LK, D)
        xv = v_ref[0].astype(cdt)                                 # (LV, D)
        # Feature-major projections: contract shared d_model (last dim of both).
        kh_t = jax.lax.dot_general(wk_ref[...], xk, (((1,), (1,)), ((), ())),
                                   preferred_element_type=jnp.float32)   # (H*dk, LK)
        vh_t = jax.lax.dot_general(wv_ref[...], xv, (((1,), (1,)), ((), ())),
                                   preferred_element_type=jnp.float32)   # (H*dv, LV)
        # Head split = leading-dim reshape; K additionally gets a batched minor-dim
        # swap so QK^T contracts d_k on the last dim of both operands.
        kh_sc[...] = jnp.swapaxes(kh_t.reshape(n_head, d_k, len_k), 1, 2).astype(cdt)
        vh_sc[...] = vh_t.reshape(n_head, d_v, len_v).astype(cdt)        # (H, dv, LV)

    xq = q_ref[0]                                                 # (TQ, D)
    residual = xq.astype(jnp.float32)

    # --- Q projection (1/temperature pre-folded into Wq), feature-major + head split.
    qh_t = jax.lax.dot_general(wq_ref[...], xq.astype(cdt), (((1,), (1,)), ((), ())),
                               preferred_element_type=jnp.float32)        # (H*dk, TQ)
    qh = jnp.swapaxes(qh_t.reshape(n_head, d_k, tq), 1, 2).astype(cdt)    # (H, TQ, dk)

    # --- Scores: head-batched QK^T, contraction over d_k (last dim of both).
    s = jax.lax.dot_general(qh, kh_sc[...], (((2,), (2,)), ((0,), (0,))),
                            preferred_element_type=jnp.float32)           # (H, TQ, LK)

    # --- Numerically stable softmax; exp optionally in bf16 (EUP-bound slot).
    m = jnp.max(s, axis=-1, keepdims=True)
    p = jnp.exp((s - m).astype(exp_dtype))
    denom = jnp.sum(p.astype(jnp.float32), axis=-1, keepdims=True)        # (H, TQ, 1)
    inv = pl.reciprocal(denom, approx=True).astype(p.dtype)               # EUP divide
    p = (p * inv).astype(cdt)                                             # (H, TQ, LK)

    # --- PV: V kept feature-major (H, dv, LV) so keys are the last dim of both.
    ctx_t = jax.lax.dot_general(vh_sc[...], p, (((2,), (2,)), ((0,), (0,))),
                                preferred_element_type=jnp.float32)       # (H, dv, TQ)
    # Merge heads lane-dense: (H, dv, TQ) -> (H*dv, TQ) -> (TQ, H*dv).
    ctx = jnp.swapaxes(ctx_t.reshape(n_head * d_v, tq), 0, 1).astype(cdt)

    # --- Output projection (w_fc in PyTorch (D, H*dv) layout) + residual + LayerNorm.
    y = jax.lax.dot_general(ctx, wfc_ref[...], (((1,), (1,)), ((), ())),
                            preferred_element_type=jnp.float32) + residual  # (TQ, D)
    mean = jnp.mean(y, axis=-1, keepdims=True)
    var = jnp.mean(jnp.square(y - mean), axis=-1, keepdims=True)  # biased, like nn.LayerNorm
    y = (y - mean) * jax.lax.rsqrt(var + eps)
    y = y * gamma_ref[...].astype(jnp.float32) + beta_ref[...].astype(jnp.float32)
    o_ref[0] = y.astype(o_ref.dtype)


def multi_head_attention(q, k, v, w_q, w_k, w_v, w_fc, gamma, beta, *,
                         n_head, d_k, d_v, mask=None, compute_dtype=None,
                         max_q_tile=256):
    """q,k,v: (B, L, d_model).  Weights in PyTorch nn.Linear (out, in) layout."""
    if mask is not None:
        raise NotImplementedError("attention mask is not supported by this kernel")
    sz_b, len_q, d_model = q.shape
    len_k = k.shape[1]
    len_v = v.shape[1]
    assert len_k == len_v, "attention requires len_k == len_v"

    temperature = float(d_k) ** 0.5
    eps = 1e-6
    cdt = jnp.dtype(compute_dtype) if compute_dtype is not None else jnp.dtype(q.dtype)
    exp_dtype = cdt if cdt == jnp.dtype(jnp.bfloat16) else jnp.dtype(jnp.float32)

    # Weights stay in their native PyTorch (out_features, in_features) layout; the
    # kernel contracts them on the last dim (no in-kernel weight transposes).
    wq_s = (w_q.astype(jnp.float32) / temperature).astype(cdt)   # (H*dk, D), scale folded
    wk_c = w_k.astype(cdt)                                       # (H*dk, D)
    wv_c = w_v.astype(cdt)                                       # (H*dv, D)
    wfc_c = w_fc.astype(cdt)                                     # (D, H*dv)
    gamma2 = gamma.reshape(1, d_model).astype(cdt)
    beta2 = beta.reshape(1, d_model).astype(cdt)

    # q-tile size bounded at `max_q_tile` rows (VMEM-friendly on v7x's 64 MiB);
    # pad len_q up to a multiple of the tile instead of silently disabling tiling.
    tq = len_q if len_q <= max_q_tile else max_q_tile
    pad_q = (-len_q) % tq
    q_in = jnp.pad(q, ((0, 0), (0, pad_q), (0, 0))) if pad_q else q
    len_q_p = len_q + pad_q
    n_qt = len_q_p // tq

    kernel = functools.partial(mha_kernel, n_head=n_head, d_k=d_k, d_v=d_v,
                               eps=eps, exp_dtype=exp_dtype)

    # Advisory cost estimate so XLA can schedule around this custom call.
    flops_per_b = 2 * (len_k * d_model * n_head * d_k          # K proj (once / batch)
                       + len_v * d_model * n_head * d_v        # V proj (once / batch)
                       + len_q_p * d_model * n_head * d_k      # Q proj
                       + n_head * len_q_p * len_k * d_k        # QK^T
                       + n_head * len_q_p * len_k * d_v        # PV
                       + len_q_p * n_head * d_v * d_model)     # output proj
    itm_in = jnp.dtype(q.dtype).itemsize
    itm_c = cdt.itemsize
    bytes_accessed = (itm_in * (2 * q_in.size + k.size + v.size)
                      + itm_c * (wq_s.size + wk_c.size + wv_c.size + wfc_c.size
                                 + gamma2.size + beta2.size))
    cost = pl.CostEstimate(flops=int(sz_b * flops_per_b),
                           transcendentals=int(sz_b * n_head * len_q_p * len_k),
                           bytes_accessed=int(bytes_accessed))

    # Rough per-core working-set estimate -> explicit scoped-VMEM limit (the
    # scoped default is only 16 MiB on v5e / 32 MiB on v6e & v7x).
    est = (4 * tq * d_model * itm_in                               # q + out tiles, x2 buffers
           + 2 * (len_k + len_v) * d_model * itm_in                # k / v blocks, x2 buffers
           + 2 * (2 * n_head * d_k + 2 * n_head * d_v) * d_model * itm_c  # weights (<=2 copies)
           + (n_head * len_k * max(d_k, 128)
              + n_head * max(d_v, 8) * len_v) * itm_c              # K/V scratch ((8,128) padded)
           + 3 * n_head * tq * len_k * 4                           # scores/probs f32 temporaries
           + 6 * tq * d_model * 4)                                 # projection / LN temporaries
    vmem_limit_bytes = int(min(96 * 2 ** 20, max(32 * 2 ** 20, int(1.5 * est))))

    def build(single_buffer_consts):
        def const_spec(shape):
            if single_buffer_consts:
                # Constant index_map -> fetched once; double-buffering is pure waste.
                return pl.BlockSpec(shape, lambda b, qi: (0, 0),
                                    pipeline_mode=pl.Buffered(buffer_count=1))
            return pl.BlockSpec(shape, lambda b, qi: (0, 0))

        grid_spec = pltpu.PrefetchScalarGridSpec(
            num_scalar_prefetch=0,
            grid=(sz_b, n_qt),
            in_specs=[
                pl.BlockSpec((1, tq, d_model), lambda b, qi: (b, qi, 0)),    # q tile
                pl.BlockSpec((1, len_k, d_model), lambda b, qi: (b, 0, 0)),  # k (full, per batch)
                pl.BlockSpec((1, len_v, d_model), lambda b, qi: (b, 0, 0)),  # v (full, per batch)
                const_spec((n_head * d_k, d_model)),                         # Wq (scaled)
                const_spec((n_head * d_k, d_model)),                         # Wk
                const_spec((n_head * d_v, d_model)),                         # Wv
                const_spec((d_model, n_head * d_v)),                         # Wfc
                const_spec((1, d_model)),                                    # gamma
                const_spec((1, d_model)),                                    # beta
            ],
            out_specs=pl.BlockSpec((1, tq, d_model), lambda b, qi: (b, qi, 0)),
            scratch_shapes=[
                pltpu.VMEM((n_head, len_k, d_k), cdt),   # projected K, (H, LK, dk)
                pltpu.VMEM((n_head, d_v, len_v), cdt),   # projected V, (H, dv, LV)
            ],
        )
        return pl.pallas_call(
            kernel,
            out_shape=jax.ShapeDtypeStruct((sz_b, len_q_p, d_model), q.dtype),
            grid_spec=grid_spec,
            compiler_params=pltpu.CompilerParams(
                dimension_semantics=("parallel", "arbitrary"),
                vmem_limit_bytes=vmem_limit_bytes),
            cost_estimate=cost,
        )

    args = (q_in, k, v, wq_s, wk_c, wv_c, wfc_c, gamma2, beta2)
    try:
        out = build(True)(*args)
    except Exception:
        # Fallback for jax versions without BlockSpec pipeline_mode / Buffered(1):
        # identical semantics, plain (double-buffered) constant specs.
        out = build(False)(*args)

    if pad_q:
        out = out[:, :len_q, :]
    return out


def mha_reference(q, k, v, w_q, w_k, w_v, w_fc, gamma, beta, *, n_head, d_k, d_v):
    """Pure-JAX reference mirroring the PyTorch forward (eval mode, mask=None)."""
    sz_b, len_q, d_model = q.shape
    residual = q
    qp = (q @ w_q.T).reshape(sz_b, len_q, n_head, d_k).transpose(0, 2, 1, 3)
    kp = (k @ w_k.T).reshape(sz_b, k.shape[1], n_head, d_k).transpose(0, 2, 1, 3)
    vp = (v @ w_v.T).reshape(sz_b, v.shape[1], n_head, d_v).transpose(0, 2, 1, 3)
    attn = jnp.einsum("bhqd,bhkd->bhqk", qp / (d_k ** 0.5), kp)
    attn = jax.nn.softmax(attn, axis=-1)
    out = jnp.einsum("bhqk,bhkd->bhqd", attn, vp)
    out = out.transpose(0, 2, 1, 3).reshape(sz_b, len_q, n_head * d_v)
    out = out @ w_fc.T + residual
    mean = jnp.mean(out, axis=-1, keepdims=True)
    var = jnp.mean((out - mean) ** 2, axis=-1, keepdims=True)
    out = (out - mean) / jnp.sqrt(var + 1e-6)
    return out * gamma + beta


if __name__ == "__main__":
    # Small deterministic setup consistent with the module's constructor.
    n_head, d_model, d_k, d_v = 4, 32, 8, 8
    sz_b, len_q, len_kv = 2, 12, 16

    key = jax.random.PRNGKey(0)
    kq, kk, kv, kwq, kwk, kwv, kwf = jax.random.split(key, 7)

    q = jax.random.normal(kq, (sz_b, len_q, d_model), dtype=jnp.float32)
    k = jax.random.normal(kk, (sz_b, len_kv, d_model), dtype=jnp.float32)
    v = jax.random.normal(kv, (sz_b, len_kv, d_model), dtype=jnp.float32)

    # nn.Linear weights in PyTorch (out_features, in_features) layout.
    w_q = 0.1 * jax.random.normal(kwq, (n_head * d_k, d_model), dtype=jnp.float32)
    w_k = 0.1 * jax.random.normal(kwk, (n_head * d_k, d_model), dtype=jnp.float32)
    w_v = 0.1 * jax.random.normal(kwv, (n_head * d_v, d_model), dtype=jnp.float32)
    w_fc = 0.1 * jax.random.normal(kwf, (d_model, n_head * d_v), dtype=jnp.float32)

    gamma = jnp.ones((d_model,), dtype=jnp.float32)   # LayerNorm weight
    beta = jnp.zeros((d_model,), dtype=jnp.float32)   # LayerNorm bias

    # max_q_tile=8 so this tiny example exercises multiple q tiles, the K/V scratch
    # carry across the arbitrary grid axis, and the len_q padding path (12 -> 16).
    out = multi_head_attention(q, k, v, w_q, w_k, w_v, w_fc, gamma, beta,
                               n_head=n_head, d_k=d_k, d_v=d_v, max_q_tile=8)
    out = jax.block_until_ready(out)

    ref = mha_reference(q, k, v, w_q, w_k, w_v, w_fc, gamma, beta,
                        n_head=n_head, d_k=d_k, d_v=d_v)
    assert out.shape == (sz_b, len_q, d_model)
    assert jnp.allclose(out, ref, rtol=2e-2, atol=2e-2), "mismatch vs JAX reference"

    print("KERNEL_OK")
</pallas_src>

<mosaic_0001>
module attributes {stable_mosaic.version = 11 : i64} {
  func.func @mha_kernel(%arg0: i32, %arg1: i32, %arg2: memref<1x8x32xf32, #tpu.memory_space<vmem>>, %arg3: memref<1x16x32xf32, #tpu.memory_space<vmem>>, %arg4: memref<1x16x32xf32, #tpu.memory_space<vmem>>, %arg5: memref<32x32xf32, #tpu.memory_space<vmem>>, %arg6: memref<32x32xf32, #tpu.memory_space<vmem>>, %arg7: memref<32x32xf32, #tpu.memory_space<vmem>>, %arg8: memref<32x32xf32, #tpu.memory_space<vmem>>, %arg9: memref<1x32xf32, #tpu.memory_space<vmem>>, %arg10: memref<1x32xf32, #tpu.memory_space<vmem>>, %arg11: memref<1x8x32xf32, #tpu.memory_space<vmem>>, %arg12: memref<4x16x8xf32, #tpu.memory_space<vmem>>, %arg13: memref<4x8x16xf32, #tpu.memory_space<vmem>>) attributes {dimension_semantics = [#tpu.dimension_semantics<parallel>, #tpu.dimension_semantics<arbitrary>], iteration_bounds = array<i64: 2, 2>, scalar_prefetch = 0 : i64, scratch_operands = 2 : i64, tpu.core_type = #tpu.core_type<tc>, window_params = [{transform_indices = @transform_0, window_bounds = array<i64: 1, 8, 32>}, {transform_indices = @transform_1, window_bounds = array<i64: 1, 16, 32>}, {transform_indices = @transform_2, window_bounds = array<i64: 1, 16, 32>}, {pipeline_mode = #tpu.pipeline_mode<synchronous>, transform_indices = @transform_3, window_bounds = array<i64: 32, 32>}, {pipeline_mode = #tpu.pipeline_mode<synchronous>, transform_indices = @transform_4, window_bounds = array<i64: 32, 32>}, {pipeline_mode = #tpu.pipeline_mode<synchronous>, transform_indices = @transform_5, window_bounds = array<i64: 32, 32>}, {pipeline_mode = #tpu.pipeline_mode<synchronous>, transform_indices = @transform_6, window_bounds = array<i64: 32, 32>}, {pipeline_mode = #tpu.pipeline_mode<synchronous>, transform_indices = @transform_7, window_bounds = array<i64: 1, 32>}, {pipeline_mode = #tpu.pipeline_mode<synchronous>, transform_indices = @transform_8, window_bounds = array<i64: 1, 32>}, {transform_indices = @transform_9, window_bounds = array<i64: 1, 8, 32>}]} {
    %c0_i32 = arith.constant 0 : i32
    %0 = arith.cmpi eq, %arg1, %c0_i32 : i32
    %1 = arith.extui %0 : i1 to i32
    %c0_i32_0 = arith.constant 0 : i32
    %2 = arith.cmpi ne, %1, %c0_i32_0 : i32
    scf.if %2 {
      %c0_30 = arith.constant 0 : index
      %c0_31 = arith.constant 0 : index
      %c0_32 = arith.constant 0 : index
      %55 = vector.load %arg3[%c0_30, %c0_31, %c0_32] : memref<1x16x32xf32, #tpu.memory_space<vmem>>, vector<1x16x32xf32>
      %56 = vector.shape_cast %55 : vector<1x16x32xf32> to vector<16x32xf32>
      %c0_33 = arith.constant 0 : index
      %c0_34 = arith.constant 0 : index
      %c0_35 = arith.constant 0 : index
      %57 = vector.load %arg4[%c0_33, %c0_34, %c0_35] : memref<1x16x32xf32, #tpu.memory_space<vmem>>, vector<1x16x32xf32>
      %58 = vector.shape_cast %57 : vector<1x16x32xf32> to vector<16x32xf32>
      %c0_36 = arith.constant 0 : index
      %c0_37 = arith.constant 0 : index
      %59 = vector.load %arg6[%c0_36, %c0_37] : memref<32x32xf32, #tpu.memory_space<vmem>>, vector<32x32xf32>
      %cst_38 = arith.constant dense<0.000000e+00> : vector<32x16xf32>
      %60 = tpu.matmul %59, %56, %cst_38 {dimension_numbers = #tpu.dot_dimension_numbers<[1], [1], [0], [0], [0, 0, 1, 0], [], []>} : vector<32x32xf32>, vector<16x32xf32>, vector<32x16xf32> -> vector<32x16xf32>
      %c0_39 = arith.constant 0 : index
      %c0_40 = arith.constant 0 : index
      %61 = vector.load %arg7[%c0_39, %c0_40] : memref<32x32xf32, #tpu.memory_space<vmem>>, vector<32x32xf32>
      %cst_41 = arith.constant dense<0.000000e+00> : vector<32x16xf32>
      %62 = tpu.matmul %61, %58, %cst_41 {dimension_numbers = #tpu.dot_dimension_numbers<[1], [1], [0], [0], [0, 0, 1, 0], [], []>} : vector<32x32xf32>, vector<16x32xf32>, vector<32x16xf32> -> vector<32x16xf32>
      %63 = vector.shape_cast %60 : vector<32x16xf32> to vector<4x8x16xf32>
      %64 = tpu.transpose %63, [0, 2, 1] : vector<4x8x16xf32> -> vector<4x16x8xf32>
      %c0_42 = arith.constant 0 : index
      %c0_43 = arith.constant 0 : index
      %c0_44 = arith.constant 0 : index
      %65 = vector.load %arg12[%c0_42, %c0_43, %c0_44] : memref<4x16x8xf32, #tpu.memory_space<vmem>>, vector<4x16x8xf32>
      tpu.vector_store %arg12[%c0_42, %c0_43, %c0_44], %64 {strides = array<i32>} : memref<4x16x8xf32, #tpu.memory_space<vmem>>, vector<4x16x8xf32>,
      %66 = vector.shape_cast %62 : vector<32x16xf32> to vector<4x8x16xf32>
      %c0_45 = arith.constant 0 : index
      %c0_46 = arith.constant 0 : index
      %c0_47 = arith.constant 0 : index
      %67 = vector.load %arg13[%c0_45, %c0_46, %c0_47] : memref<4x8x16xf32, #tpu.memory_space<vmem>>, vector<4x8x16xf32>
      tpu.vector_store %arg13[%c0_45, %c0_46, %c0_47], %66 {strides = array<i32>} : memref<4x8x16xf32, #tpu.memory_space<vmem>>, vector<4x8x16xf32>,
    } else {
    }
    %c0 = arith.constant 0 : index
    %c0_1 = arith.constant 0 : index
    %c0_2 = arith.constant 0 : index
    %3 = vector.load %arg2[%c0, %c0_1, %c0_2] : memref<1x8x32xf32, #tpu.memory_space<vmem>>, vector<1x8x32xf32>
    %4 = vector.shape_cast %3 : vector<1x8x32xf32> to vector<8x32xf32>
    %c0_3 = arith.constant 0 : index
    %c0_4 = arith.constant 0 : index
    %5 = vector.load %arg5[%c0_3, %c0_4] : memref<32x32xf32, #tpu.memory_space<vmem>>, vector<32x32xf32>
    %cst = arith.constant dense<0.000000e+00> : vector<32x8xf32>
    %6 = tpu.matmul %5, %4, %cst {dimension_numbers = #tpu.dot_dimension_numbers<[1], [1], [0], [0], [0, 0, 1, 0], [], []>} : vector<32x32xf32>, vector<8x32xf32>, vector<32x8xf32> -> vector<32x8xf32>
    %7 = vector.shape_cast %6 : vector<32x8xf32> to vector<4x8x8xf32>
    %8 = tpu.transpose %7, [0, 2, 1] : vector<4x8x8xf32> -> vector<4x8x8xf32>
    %c0_5 = arith.constant 0 : index
    %c0_6 = arith.constant 0 : index
    %c0_7 = arith.constant 0 : index
    %9 = vector.load %arg12[%c0_5, %c0_6, %c0_7] : memref<4x16x8xf32, #tpu.memory_space<vmem>>, vector<4x16x8xf32>
    %cst_8 = arith.constant dense<0.000000e+00> : vector<4x8x16xf32>
    %10 = tpu.matmul %8, %9, %cst_8 {dimension_numbers = #tpu.dot_dimension_numbers<[2], [2], [1], [1], [0, 0, 0, 1, 1, 1], [0], [0]>} : vector<4x8x8xf32>, vector<4x16x8xf32>, vector<4x8x16xf32> -> vector<4x8x16xf32>
    %cst_9 = arith.constant dense<0xFF800000> : vector<4x8xf32>
    %11 = vector.multi_reduction <maximumf>, %10, %cst_9 [2] : vector<4x8x16xf32> to vector<4x8xf32>
    %12 = vector.shape_cast %11 : vector<4x8xf32> to vector<4x8x1xf32>
    %13 = vector.broadcast %12 : vector<4x8x1xf32> to vector<4x8x16xf32>
    %14 = arith.subf %10, %13 : vector<4x8x16xf32>
    %15 = math.exp %14 : vector<4x8x16xf32>
    %cst_10 = arith.constant dense<0.000000e+00> : vector<4x8xf32>
    %16 = vector.multi_reduction <add>, %15, %cst_10 [2] : vector<4x8x16xf32> to vector<4x8xf32>
    %17 = vector.shape_cast %16 : vector<4x8xf32> to vector<4x8x1xf32>
    %18 = tpu.reciprocal %17 {approx = true} : vector<4x8x1xf32> -> vector<4x8x1xf32>
    %19 = vector.broadcast %18 : vector<4x8x1xf32> to vector<4x8x16xf32>
    %20 = arith.mulf %15, %19 : vector<4x8x16xf32>
    %c0_11 = arith.constant 0 : index
    %c0_12 = arith.constant 0 : index
    %c0_13 = arith.constant 0 : index
    %21 = vector.load %arg13[%c0_11, %c0_12, %c0_13] : memref<4x8x16xf32, #tpu.memory_space<vmem>>, vector<4x8x16xf32>
    %cst_14 = arith.constant dense<0.000000e+00> : vector<4x8x8xf32>
    %22 = tpu.matmul %21, %20, %cst_14 {dimension_numbers = #tpu.dot_dimension_numbers<[2], [2], [1], [1], [0, 0, 0, 1, 1, 1], [0], [0]>} : vector<4x8x16xf32>, vector<4x8x16xf32>, vector<4x8x8xf32> -> vector<4x8x8xf32>
    %23 = vector.shape_cast %22 : vector<4x8x8xf32> to vector<32x8xf32>
    %24 = tpu.transpose %23, [1, 0] : vector<32x8xf32> -> vector<8x32xf32>
    %c0_15 = arith.constant 0 : index
    %c0_16 = arith.constant 0 : index
    %25 = vector.load %arg8[%c0_15, %c0_16] : memref<32x32xf32, #tpu.memory_space<vmem>>, vector<32x32xf32>
    %cst_17 = arith.constant dense<0.000000e+00> : vector<8x32xf32>
    %26 = tpu.matmul %24, %25, %cst_17 {dimension_numbers = #tpu.dot_dimension_numbers<[1], [1], [0], [0], [0, 0, 1, 0], [], []>} : vector<8x32xf32>, vector<32x32xf32>, vector<8x32xf32> -> vector<8x32xf32>
    %27 = arith.addf %26, %4 : vector<8x32xf32>
    %cst_18 = arith.constant dense<0.000000e+00> : vector<8xf32>
    %28 = vector.multi_reduction <add>, %27, %cst_18 [1] : vector<8x32xf32> to vector<8xf32>
    %29 = vector.shape_cast %28 : vector<8xf32> to vector<8x1xf32>
    %cst_19 = arith.constant 3.200000e+01 : f32
    %30 = vector.broadcast %cst_19 : f32 to vector<8x1xf32>
    %31 = arith.divf %29, %30 : vector<8x1xf32>
    %32 = vector.broadcast %31 : vector<8x1xf32> to vector<8x32xf32>
    %33 = arith.subf %27, %32 : vector<8x32xf32>
    %34 = arith.mulf %33, %33 : vector<8x32xf32>
    %cst_20 = arith.constant dense<0.000000e+00> : vector<8xf32>
    %35 = vector.multi_reduction <add>, %34, %cst_20 [1] : vector<8x32xf32> to vector<8xf32>
    %36 = vector.shape_cast %35 : vector<8xf32> to vector<8x1xf32>
    %cst_21 = arith.constant 3.200000e+01 : f32
    %37 = vector.broadcast %cst_21 : f32 to vector<8x1xf32>
    %38 = arith.divf %36, %37 : vector<8x1xf32>
    %39 = vector.broadcast %31 : vector<8x1xf32> to vector<8x32xf32>
    %40 = arith.subf %27, %39 : vector<8x32xf32>
    %cst_22 = arith.constant 9.99999997E-7 : f32
    %41 = vector.broadcast %cst_22 : f32 to vector<8x1xf32>
    %42 = arith.addf %38, %41 : vector<8x1xf32>
    %43 = math.rsqrt %42 : vector<8x1xf32>
    %44 = vector.broadcast %43 : vector<8x1xf32> to vector<8x32xf32>
    %45 = arith.mulf %40, %44 : vector<8x32xf32>
    %c0_23 = arith.constant 0 : index
    %c0_24 = arith.constant 0 : index
    %46 = vector.load %arg9[%c0_23, %c0_24] : memref<1x32xf32, #tpu.memory_space<vmem>>, vector<1x32xf32>
    %47 = vector.broadcast %46 : vector<1x32xf32> to vector<8x32xf32>
    %48 = arith.mulf %45, %47 : vector<8x32xf32>
    %c0_25 = arith.constant 0 : index
    %c0_26 = arith.constant 0 : index
    %49 = vector.load %arg10[%c0_25, %c0_26] : memref<1x32xf32, #tpu.memory_space<vmem>>, vector<1x32xf32>
    %50 = vector.broadcast %49 : vector<1x32xf32> to vector<8x32xf32>
    %51 = arith.addf %48, %50 : vector<8x32xf32>
    %c0_27 = arith.constant 0 : index
    %c0_28 = arith.constant 0 : index
    %c0_29 = arith.constant 0 : index
    %52 = vector.load %arg11[%c0_27, %c0_28, %c0_29] : memref<1x8x32xf32, #tpu.memory_space<vmem>>, vector<1x8x32xf32>
    %53 = vector.shape_cast %52 : vector<1x8x32xf32> to vector<8x32xf32>
    %54 = vector.shape_cast %51 : vector<8x32xf32> to vector<1x8x32xf32>
    tpu.vector_store %arg11[%c0_27, %c0_28, %c0_29], %54 {strides = array<i32>} : memref<1x8x32xf32, #tpu.memory_space<vmem>>, vector<1x8x32xf32>,
    return
  }
  func.func @transform_0(%arg0: i32, %arg1: i32) -> (i32, i32, i32) {
    %c0_i32 = arith.constant 0 : i32
    %c0_i32_0 = arith.constant 0 : i32
    return %arg0, %arg1, %c0_i32 : i32, i32, i32
  }
  func.func @transform_1(%arg0: i32, %arg1: i32) -> (i32, i32, i32) {
    %c0_i32 = arith.constant 0 : i32
    %c0_i32_0 = arith.constant 0 : i32
    %c0_i32_1 = arith.constant 0 : i32
    return %arg0, %c0_i32, %c0_i32_0 : i32, i32, i32
  }
  func.func @transform_2(%arg0: i32, %arg1: i32) -> (i32, i32, i32) {
    %c0_i32 = arith.constant 0 : i32
    %c0_i32_0 = arith.constant 0 : i32
    %c0_i32_1 = arith.constant 0 : i32
    return %arg0, %c0_i32, %c0_i32_0 : i32, i32, i32
  }
  func.func @transform_3(%arg0: i32, %arg1: i32) -> (i32, i32) {
    %c0_i32 = arith.constant 0 : i32
    %c0_i32_0 = arith.constant 0 : i32
    %c0_i32_1 = arith.constant 0 : i32
    return %c0_i32, %c0_i32_0 : i32, i32
  }
  func.func @transform_4(%arg0: i32, %arg1: i32) -> (i32, i32) {
    %c0_i32 = arith.constant 0 : i32
    %c0_i32_0 = arith.constant 0 : i32
    %c0_i32_1 = arith.constant 0 : i32
    return %c0_i32, %c0_i32_0 : i32, i32
  }
  func.func @transform_5(%arg0: i32, %arg1: i32) -> (i32, i32) {
    %c0_i32 = arith.constant 0 : i32
    %c0_i32_0 = arith.constant 0 : i32
    %c0_i32_1 = arith.constant 0 : i32
    return %c0_i32, %c0_i32_0 : i32, i32
  }
  func.func @transform_6(%arg0: i32, %arg1: i32) -> (i32, i32) {
    %c0_i32 = arith.constant 0 : i32
    %c0_i32_0 = arith.constant 0 : i32
    %c0_i32_1 = arith.constant 0 : i32
    return %c0_i32, %c0_i32_0 : i32, i32
  }
  func.func @transform_7(%arg0: i32, %arg1: i32) -> (i32, i32) {
    %c0_i32 = arith.constant 0 : i32
    %c0_i32_0 = arith.constant 0 : i32
    %c0_i32_1 = arith.constant 0 : i32
    return %c0_i32, %c0_i32_0 : i32, i32
  }
  func.func @transform_8(%arg0: i32, %arg1: i32) -> (i32, i32) {
    %c0_i32 = arith.constant 0 : i32
    %c0_i32_0 = arith.constant 0 : i32
    %c0_i32_1 = arith.constant 0 : i32
    return %c0_i32, %c0_i32_0 : i32, i32
  }
  func.func @transform_9(%arg0: i32, %arg1: i32) -> (i32, i32, i32) {
    %c0_i32 = arith.constant 0 : i32
    %c0_i32_0 = arith.constant 0 : i32
    return %arg0, %arg1, %c0_i32 : i32, i32, i32
  }
}

module attributes {stable_mosaic.version = 11 : i64} {
  func.func @mha_kernel(%arg0: i32, %arg1: i32, %arg2: memref<1x8x32xf32, #tpu.memory_space<vmem>>, %arg3: memref<1x16x32xf32, #tpu.memory_space<vmem>>, %arg4: memref<1x16x32xf32, #tpu.memory_space<vmem>>, %arg5: memref<32x32xf32, #tpu.memory_space<vmem>>, %arg6: memref<32x32xf32, #tpu.memory_space<vmem>>, %arg7: memref<32x32xf32, #tpu.memory_space<vmem>>, %arg8: memref<32x32xf32, #tpu.memory_space<vmem>>, %arg9: memref<1x32xf32, #tpu.memory_space<vmem>>, %arg10: memref<1x32xf32, #tpu.memory_space<vmem>>, %arg11: memref<1x8x32xf32, #tpu.memory_space<vmem>>, %arg12: memref<4x16x8xf32, #tpu.memory_space<vmem>>, %arg13: memref<4x8x16xf32, #tpu.memory_space<vmem>>) attributes {dimension_semantics = [#tpu.dimension_semantics<parallel>, #tpu.dimension_semantics<arbitrary>], iteration_bounds = array<i64: 2, 2>, scalar_prefetch = 0 : i64, scratch_operands = 2 : i64, tpu.core_type = #tpu.core_type<tc>, window_params = [{transform_indices = @transform_0, window_bounds = array<i64: 1, 8, 32>}, {transform_indices = @transform_1, window_bounds = array<i64: 1, 16, 32>}, {transform_indices = @transform_2, window_bounds = array<i64: 1, 16, 32>}, {pipeline_mode = #tpu.pipeline_mode<synchronous>, transform_indices = @transform_3, window_bounds = array<i64: 32, 32>}, {pipeline_mode = #tpu.pipeline_mode<synchronous>, transform_indices = @transform_4, window_bounds = array<i64: 32, 32>}, {pipeline_mode = #tpu.pipeline_mode<synchronous>, transform_indices = @transform_5, window_bounds = array<i64: 32, 32>}, {pipeline_mode = #tpu.pipeline_mode<synchronous>, transform_indices = @transform_6, window_bounds = array<i64: 32, 32>}, {pipeline_mode = #tpu.pipeline_mode<synchronous>, transform_indices = @transform_7, window_bounds = array<i64: 1, 32>}, {pipeline_mode = #tpu.pipeline_mode<synchronous>, transform_indices = @transform_8, window_bounds = array<i64: 1, 32>}, {transform_indices = @transform_9, window_bounds = array<i64: 1, 8, 32>}]} {
    %c0_i32 = arith.constant 0 : i32
    %0 = arith.cmpi eq, %arg1, %c0_i32 : i32
    %1 = arith.extui %0 : i1 to i32
    %c0_i32_0 = arith.constant 0 : i32
    %2 = arith.cmpi ne, %1, %c0_i32_0 : i32
    scf.if %2 {
      %c0_30 = arith.constant 0 : index
      %c0_31 = arith.constant 0 : index
      %c0_32 = arith.constant 0 : index
      %55 = vector.load %arg3[%c0_30, %c0_31, %c0_32] : memref<1x16x32xf32, #tpu.memory_space<vmem>>, vector<1x16x32xf32>
      %56 = vector.shape_cast %55 : vector<1x16x32xf32> to vector<16x32xf32>
      %c0_33 = arith.constant 0 : index
      %c0_34 = arith.constant 0 : index
      %c0_35 = arith.constant 0 : index
      %57 = vector.load %arg4[%c0_33, %c0_34, %c0_35] : memref<1x16x32xf32, #tpu.memory_space<vmem>>, vector<1x16x32xf32>
      %58 = vector.shape_cast %57 : vector<1x16x32xf32> to vector<16x32xf32>
      %c0_36 = arith.constant 0 : index
      %c0_37 = arith.constant 0 : index
      %59 = vector.load %arg6[%c0_36, %c0_37] : memref<32x32xf32, #tpu.memory_space<vmem>>, vector<32x32xf32>
      %cst_38 = arith.constant dense<0.000000e+00> : vector<32x16xf32>
      %60 = tpu.matmul %59, %56, %cst_38 {dimension_numbers = #tpu.dot_dimension_numbers<[1], [1], [0], [0], [0, 0, 1, 0], [], []>} : vector<32x32xf32>, vector<16x32xf32>, vector<32x16xf32> -> vector<32x16xf32>
      %c0_39 = arith.constant 0 : index
      %c0_40 = arith.constant 0 : index
      %61 = vector.load %arg7[%c0_39, %c0_40] : memref<32x32xf32, #tpu.memory_space<vmem>>, vector<32x32xf32>
      %cst_41 = arith.constant dense<0.000000e+00> : vector<32x16xf32>
      %62 = tpu.matmul %61, %58, %cst_41 {dimension_numbers = #tpu.dot_dimension_numbers<[1], [1], [0], [0], [0, 0, 1, 0], [], []>} : vector<32x32xf32>, vector<16x32xf32>, vector<32x16xf32> -> vector<32x16xf32>
      %63 = vector.shape_cast %60 : vector<32x16xf32> to vector<4x8x16xf32>
      %64 = tpu.transpose %63, [0, 2, 1] : vector<4x8x16xf32> -> vector<4x16x8xf32>
      %c0_42 = arith.constant 0 : index
      %c0_43 = arith.constant 0 : index
      %c0_44 = arith.constant 0 : index
      %65 = vector.load %arg12[%c0_42, %c0_43, %c0_44] : memref<4x16x8xf32, #tpu.memory_space<vmem>>, vector<4x16x8xf32>
      tpu.vector_store %arg12[%c0_42, %c0_43, %c0_44], %64 {strides = array<i32>} : memref<4x16x8xf32, #tpu.memory_space<vmem>>, vector<4x16x8xf32>,
      %66 = vector.shape_cast %62 : vector<32x16xf32> to vector<4x8x16xf32>
      %c0_45 = arith.constant 0 : index
      %c0_46 = arith.constant 0 : index
      %c0_47 = arith.constant 0 : index
      %67 = vector.load %arg13[%c0_45, %c0_46, %c0_47] : memref<4x8x16xf32, #tpu.memory_space<vmem>>, vector<4x8x16xf32>
      tpu.vector_store %arg13[%c0_45, %c0_46, %c0_47], %66 {strides = array<i32>} : memref<4x8x16xf32, #tpu.memory_space<vmem>>, vector<4x8x16xf32>,
    } else {
    }
    %c0 = arith.constant 0 : index
    %c0_1 = arith.constant 0 : index
    %c0_2 = arith.constant 0 : index
    %3 = vector.load %arg2[%c0, %c0_1, %c0_2] : memref<1x8x32xf32, #tpu.memory_space<vmem>>, vector<1x8x32xf32>
    %4 = vector.shape_cast %3 : vector<1x8x32xf32> to vector<8x32xf32>
    %c0_3 = arith.constant 0 : index
    %c0_4 = arith.constant 0 : index
    %5 = vector.load %arg5[%c0_3, %c0_4] : memref<32x32xf32, #tpu.memory_space<vmem>>, vector<32x32xf32>
    %cst = arith.constant dense<0.000000e+00> : vector<32x8xf32>
    %6 = tpu.matmul %5, %4, %cst {dimension_numbers = #tpu.dot_dimension_numbers<[1], [1], [0], [0], [0, 0, 1, 0], [], []>} : vector<32x32xf32>, vector<8x32xf32>, vector<32x8xf32> -> vector<32x8xf32>
    %7 = vector.shape_cast %6 : vector<32x8xf32> to vector<4x8x8xf32>
    %8 = tpu.transpose %7, [0, 2, 1] : vector<4x8x8xf32> -> vector<4x8x8xf32>
    %c0_5 = arith.constant 0 : index
    %c0_6 = arith.constant 0 : index
    %c0_7 = arith.constant 0 : index
    %9 = vector.load %arg12[%c0_5, %c0_6, %c0_7] : memref<4x16x8xf32, #tpu.memory_space<vmem>>, vector<4x16x8xf32>
    %cst_8 = arith.constant dense<0.000000e+00> : vector<4x8x16xf32>
    %10 = tpu.matmul %8, %9, %cst_8 {dimension_numbers = #tpu.dot_dimension_numbers<[2], [2], [1], [1], [0, 0, 0, 1, 1, 1], [0], [0]>} : vector<4x8x8xf32>, vector<4x16x8xf32>, vector<4x8x16xf32> -> vector<4x8x16xf32>
    %cst_9 = arith.constant dense<0xFF800000> : vector<4x8xf32>
    %11 = vector.multi_reduction <maximumf>, %10, %cst_9 [2] : vector<4x8x16xf32> to vector<4x8xf32>
    %12 = vector.shape_cast %11 : vector<4x8xf32> to vector<4x8x1xf32>
    %13 = vector.broadcast %12 : vector<4x8x1xf32> to vector<4x8x16xf32>
    %14 = arith.subf %10, %13 : vector<4x8x16xf32>
    %15 = math.exp %14 : vector<4x8x16xf32>
    %cst_10 = arith.constant dense<0.000000e+00> : vector<4x8xf32>
    %16 = vector.multi_reduction <add>, %15, %cst_10 [2] : vector<4x8x16xf32> to vector<4x8xf32>
    %17 = vector.shape_cast %16 : vector<4x8xf32> to vector<4x8x1xf32>
    %18 = tpu.reciprocal %17 {approx = true} : vector<4x8x1xf32> -> vector<4x8x1xf32>
    %19 = vector.broadcast %18 : vector<4x8x1xf32> to vector<4x8x16xf32>
    %20 = arith.mulf %15, %19 : vector<4x8x16xf32>
    %c0_11 = arith.constant 0 : index
    %c0_12 = arith.constant 0 : index
    %c0_13 = arith.constant 0 : index
    %21 = vector.load %arg13[%c0_11, %c0_12, %c0_13] : memref<4x8x16xf32, #tpu.memory_space<vmem>>, vector<4x8x16xf32>
    %cst_14 = arith.constant dense<0.000000e+00> : vector<4x8x8xf32>
    %22 = tpu.matmul %21, %20, %cst_14 {dimension_numbers = #tpu.dot_dimension_numbers<[2], [2], [1], [1], [0, 0, 0, 1, 1, 1], [0], [0]>} : vector<4x8x16xf32>, vector<4x8x16xf32>, vector<4x8x8xf32> -> vector<4x8x8xf32>
    %23 = vector.shape_cast %22 : vector<4x8x8xf32> to vector<32x8xf32>
    %24 = tpu.transpose %23, [1, 0] : vector<32x8xf32> -> vector<8x32xf32>
    %c0_15 = arith.constant 0 : index
    %c0_16 = arith.constant 0 : index
    %25 = vector.load %arg8[%c0_15, %c0_16] : memref<32x32xf32, #tpu.memory_space<vmem>>, vector<32x32xf32>
    %cst_17 = arith.constant dense<0.000000e+00> : vector<8x32xf32>
    %26 = tpu.matmul %24, %25, %cst_17 {dimension_numbers = #tpu.dot_dimension_numbers<[1], [1], [0], [0], [0, 0, 1, 0], [], []>} : vector<8x32xf32>, vector<32x32xf32>, vector<8x32xf32> -> vector<8x32xf32>
    %27 = arith.addf %26, %4 : vector<8x32xf32>
    %cst_18 = arith.constant dense<0.000000e+00> : vector<8xf32>
    %28 = vector.multi_reduction <add>, %27, %cst_18 [1] : vector<8x32xf32> to vector<8xf32>
    %29 = vector.shape_cast %28 : vector<8xf32> to vector<8x1xf32>
    %cst_19 = arith.constant 3.200000e+01 : f32
    %30 = vector.broadcast %cst_19 : f32 to vector<8x1xf32>
    %31 = arith.divf %29, %30 : vector<8x1xf32>
    %32 = vector.broadcast %31 : vector<8x1xf32> to vector<8x32xf32>
    %33 = arith.subf %27, %32 : vector<8x32xf32>
    %34 = arith.mulf %33, %33 : vector<8x32xf32>
    %cst_20 = arith.constant dense<0.000000e+00> : vector<8xf32>
    %35 = vector.multi_reduction <add>, %34, %cst_20 [1] : vector<8x32xf32> to vector<8xf32>
    %36 = vector.shape_cast %35 : vector<8xf32> to vector<8x1xf32>
    %cst_21 = arith.constant 3.200000e+01 : f32
    %37 = vector.broadcast %cst_21 : f32 to vector<8x1xf32>
    %38 = arith.divf %36, %37 : vector<8x1xf32>
    %39 = vector.broadcast %31 : vector<8x1xf32> to vector<8x32xf32>
    %40 = arith.subf %27, %39 : vector<8x32xf32>
    %cst_22 = arith.constant 9.99999997E-7 : f32
    %41 = vector.broadcast %cst_22 : f32 to vector<8x1xf32>
    %42 = arith.addf %38, %41 : vector<8x1xf32>
    %43 = math.rsqrt %42 : vector<8x1xf32>
    %44 = vector.broadcast %43 : vector<8x1xf32> to vector<8x32xf32>
    %45 = arith.mulf %40, %44 : vector<8x32xf32>
    %c0_23 = arith.constant 0 : index
    %c0_24 = arith.constant 0 : index
    %46 = vector.load %arg9[%c0_23, %c0_24] : memref<1x32xf32, #tpu.memory_space<vmem>>, vector<1x32xf32>
    %47 = vector.broadcast %46 : vector<1x32xf32> to vector<8x32xf32>
    %48 = arith.mulf %45, %47 : vector<8x32xf32>
    %c0_25 = arith.constant 0 : index
    %c0_26 = arith.constant 0 : index
    %49 = vector.load %arg10[%c0_25, %c0_26] : memref<1x32xf32, #tpu.memory_space<vmem>>, vector<1x32xf32>
    %50 = vector.broadcast %49 : vector<1x32xf32> to vector<8x32xf32>
    %51 = arith.addf %48, %50 : vector<8x32xf32>
    %c0_27 = arith.constant 0 : index
    %c0_28 = arith.constant 0 : index
    %c0_29 = arith.constant 0 : index
    %52 = vector.load %arg11[%c0_27, %c0_28, %c0_29] : memref<1x8x32xf32, #tpu.memory_space<vmem>>, vector<1x8x32xf32>
    %53 = vector.shape_cast %52 : vector<1x8x32xf32> to vector<8x32xf32>
    %54 = vector.shape_cast %51 : vector<8x32xf32> to vector<1x8x32xf32>
    tpu.vector_store %arg11[%c0_27, %c0_28, %c0_29], %54 {strides = array<i32>} : memref<1x8x32xf32, #tpu.memory_space<vmem>>, vector<1x8x32xf32>,
    return
  }
  func.func @transform_0(%arg0: i32, %arg1: i32) -> (i32, i32, i32) {
    %c0_i32 = arith.constant 0 : i32
    %c0_i32_0 = arith.constant 0 : i32
    return %arg0, %arg1, %c0_i32 : i32, i32, i32
  }
  func.func @transform_1(%arg0: i32, %arg1: i32) -> (i32, i32, i32) {
    %c0_i32 = arith.constant 0 : i32
    %c0_i32_0 = arith.constant 0 : i32
    %c0_i32_1 = arith.constant 0 : i32
    return %arg0, %c0_i32, %c0_i32_0 : i32, i32, i32
  }
  func.func @transform_2(%arg0: i32, %arg1: i32) -> (i32, i32, i32) {
    %c0_i32 = arith.constant 0 : i32
    %c0_i32_0 = arith.constant 0 : i32
    %c0_i32_1 = arith.constant 0 : i32
    return %arg0, %c0_i32, %c0_i32_0 : i32, i32, i32
  }
  func.func @transform_3(%arg0: i32, %arg1: i32) -> (i32, i32) {
    %c0_i32 = arith.constant 0 : i32
    %c0_i32_0 = arith.constant 0 : i32
    %c0_i32_1 = arith.constant 0 : i32
    return %c0_i32, %c0_i32_0 : i32, i32
  }
  func.func @transform_4(%arg0: i32, %arg1: i32) -> (i32, i32) {
    %c0_i32 = arith.constant 0 : i32
    %c0_i32_0 = arith.constant 0 : i32
    %c0_i32_1 = arith.constant 0 : i32
    return %c0_i32, %c0_i32_0 : i32, i32
  }
  func.func @transform_5(%arg0: i32, %arg1: i32) -> (i32, i32) {
    %c0_i32 = arith.constant 0 : i32
    %c0_i32_0 = arith.constant 0 : i32
    %c0_i32_1 = arith.constant 0 : i32
    return %c0_i32, %c0_i32_0 : i32, i32
  }
  func.func @transform_6(%arg0: i32, %arg1: i32) -> (i32, i32) {
    %c0_i32 = arith.constant 0 : i32
    %c0_i32_0 = arith.constant 0 : i32
    %c0_i32_1 = arith.constant 0 : i32
    return %c0_i32, %c0_i32_0 : i32, i32
  }
  func.func @transform_7(%arg0: i32, %arg1: i32) -> (i32, i32) {
    %c0_i32 = arith.constant 0 : i32
    %c0_i32_0 = arith.constant 0 : i32
    %c0_i32_1 = arith.constant 0 : i32
    return %c0_i32, %c0_i32_0 : i32, i32
  }
  func.func @transform_8(%arg0: i32, %arg1: i32) -> (i32, i32) {
    %c0_i32 = arith.constant 0 : i32
    %c0_i32_0 = arith.constant 0 : i32
    %c0_i32_1 = arith.constant 0 : i32
    return %c0_i32, %c0_i32_0 : i32, i32
  }
  func.func @transform_9(%arg0: i32, %arg1: i32) -> (i32, i32, i32) {
    %c0_i32 = arith.constant 0 : i32
    %c0_i32_0 = arith.constant 0 : i32
    return %arg0, %arg1, %c0_i32 : i32, i32, i32
  }
}

</mosaic_0001>

<bundles_post_ra>
// kernel: tpu_custom_call.1
= control target key start
LH: loop header
LB: loop body
LE: loop exit
PB: predicated region body
PF: predicated region fallthrough
CT: control target
= control target key end

     0   :  { %s3508_s0 = inlined_call_operand.hbm [shape: f32[2,16,32], index: 0, kind: input, shape index: {}]   ;;  %s3509_s1 = inlined_call_operand.hbm [shape: f32[2,16,32], index: 1, kind: input, shape index: {}]   ;;  %s3510_s2 = inlined_call_operand.hbm [shape: f32[2,16,32], index: 2, kind: input, shape index: {}]   ;;  %s3511_s3 = inlined_call_operand.hbm [shape: f32[32,32], index: 3, kind: input, shape index: {}]   ;;  %s3512_s4 = inlined_call_operand.hbm [shape: f32[32,32], index: 4, kind: input, shape index: {}]   ;;  %s3513_s5 = inlined_call_operand.hbm [shape: f32[32,32], index: 5, kind: input, shape index: {}]   ;;  %s3514_s6 = inlined_call_operand.hbm [shape: f32[32,32], index: 6, kind: input, shape index: {}]   ;;  %s3515_s7 = inlined_call_operand.vmem [shape: f32[1,32], index: 7, kind: input, shape index: {}]   ;;  %s3516_s8 = inlined_call_operand.vmem [shape: f32[1,32], index: 8, kind: input, shape index: {}]   ;;  %s3517_s9 = inlined_call_operand.hbm [shape: f32[2,16,32], index: 9, kind: output, shape index: {}]  }
   0x1   :  { %3552 = sst [smem:[#allocation34_spill]] %s3508_s0 }
   0x2   :  { %3553 = sst [smem:[#allocation35_spill]] %s3509_s1 }
   0x3   :  { %3554 = sst [smem:[#allocation36_spill]] %s3511_s3 }
   0x4   :  { %3555 = sst [smem:[#allocation37_spill]] %s3512_s4 }
   0x5   :  { %3556 = sst [smem:[#allocation38_spill]] %s3513_s5 }
   0x6   :  { %3557 = sst [smem:[#allocation39_spill]] %s3514_s6 }
   0x7   :  { %3558 = sst [smem:[#allocation40_spill]] %s3515_s7 }
   0x8   :  { %3559 = sst [smem:[#allocation41_spill]] %s3516_s8 }
   0x9   :  { %3560 = sst [smem:[#allocation42_spill]] %s3517_s9 }
   0xa   :  { %14 = vsyncpa [#allocation5], 0 }
   0xb   :  { %16 = vsyncpa [#allocation5 + $0x1], 0 }
   0xc   :  { %17 = vsyncpa [#allocation8], 0 }
   0xd   :  { %19 = vsyncpa [#allocation8 + $0x1], 0 }
   0xe   :  { %20 = vsyncpa [#allocation11], 0 }
   0xf   :  { %21 = vsyncpa [#allocation14], 0 }
  0x10   :  { %22 = vsyncpa [#allocation6], 0 }
  0x11   :  { %24 = vsyncpa [#allocation6 + $0x1], 0  ;;  %s2933_s30 = smov 0   ;;  %s2935_s10 = smov 0  }
  0x12   :  { %s2937_s11 = smov 0   ;;  %s2939_s12 = smov 0  }
  0x13   :  { %s2941_s13 = smov 0   ;;  %s2943_s14 = smov 0  }
  0x14   :  { %s2945_s15 = smov 0   ;;  %s2947_s16 = smov 0  }
  0x15   :  { %s2949_s17 = smov 0   ;;  %s2951_s18 = smov 0  }
  0x16   :  { %s2953_s19 = smov 0  }
  0x17 LB: > { %3561 = sst [smem:[#allocation22_spill]] %s2832_s10  ;;  %s2989_s20 = sadd.s32 4294967295, %s2868_s19   ;;  %s2868_s19 = sphi %s2953_s19, %s30_s19   ;;  %s2864_s18 = sphi %s2951_s18, %s3636_s18   ;;  %s2860_s17 = sphi %s2949_s17, %s3635_s17   ;;  %s2856_s16 = sphi %s2947_s16, %s3634_s16   ;;  %s2852_s15 = sphi %s2945_s15, %s3633_s15   ;;  %s2848_s14 = sphi %s2943_s14, %s3632_s14   ;;  %s2844_s13 = sphi %s2941_s13, %s3631_s13   ;;  %s2840_s12 = sphi %s2939_s12, %s3630_s12   ;;  %s2836_s11 = sphi %s2937_s11, %s3629_s11   ;;  %s2832_s10 = sphi %s2935_s10, %s3626_s10   ;;  %s2828_s30 = sphi %s2933_s30, %s3625_s30  }
  0x18   : > { %3562 = sst [smem:[#allocation23_spill]] %s2836_s11  ;;  %p2114_p0 = scmp.ge.s32.totalorder %s2868_s19, 1 }
  0x19   : > { %3563 = sst [smem:[#allocation24_spill]] %s2840_s12  ;;  %p3519_p1 = scmp.eq.s32.totalorder %s2989_s20, 0 }
  0x1a   : > { %3564 = sst [smem:[#allocation25_spill]] %s2852_s15  ;;  %p281_p2 = scmp.lt.s32.totalorder %s2868_s19, 5 }
  0x1b   : > { %3565 = sst [smem:[#allocation26_spill]] %s2856_s16  ;;  %s2870_s22 = smov [#allocation10]  }
  0x1c   : > { %3566 = sst [smem:[#allocation27_spill]] %s2989_s20  ;;  %p2994_p3 = pnand %p2114_p0, %p281_p2 }
  0x1d   : > { %s293_s23 = sshll.u32 %s2870_s22, 4  ;;  %s2871_s25 = smov [#allocation13]   ;;  %s294_s23 = int_to_ptr.vmem [resolvable:$true] %s293_s23 }
  0x1e   : > { %s3567_s21 = scalar_select %p2994_p3, 1, 0 }
  0x1f   : > { %p2379_p4 = pneg %p2994_p3  ;;  %s319_s26 = sshll.u32 %s2871_s25, 4  ;;  %s3006_s26 = int_to_ptr.vmem [resolvable:$true] %s319_s26 }
  0x20   : > { %3568 = sst [smem:[#allocation28_spill]] %s3567_s21  ;;  %s3570_s3 = sld [smem:[#allocation36_spill]] }
  0x21   : > { %p3002_p5 = pnand %p2379_p4, %p3519_p1 }
  0x23   : > { %s3569_s24 = scalar_select %p3002_p5, 1, 0 }
  0x24   : > { %p3016_p7 = pneg %p3002_p5 }
  0x26   : > { %s2532_s29 = scalar_lea.hbm %s3570_s3, 512 }
  0x27   : > { %p2533_p6 = scmp.ne.s32.totalorder %s3570_s3, %s2532_s29  ;;  %p2539_p10 = scmp.lt.u32.totalorder %s2532_s29, %s3570_s3 }
  0x29   : > { %p2535_p8 = pnand %p3016_p7, %p2533_p6 }
  0x2b   : > { %p2536_p9 = pneg %p2535_p8 }
  0x2d   : > { %p2541_p11 = pnand %p2539_p10, %p2536_p9 }
  0x2f   : > { %2544 = shalt.err (!%p2541_p11)
}
  0x30   : > { %s2545_s27 = scalar_lea.vmem %s294_s23, 512  ;;  %p2553_p2 = scmp.lt.s32.totalorder %s294_s23, %s294_s23 }
  0x31   : > { %p2546_p12 = scmp.ne.s32.totalorder %s294_s23, %s2545_s27  ;;  %p2554_p4 = scmp.lt.s32.totalorder %s2545_s27, %s2545_s27 }
  0x33   : > { %p2548_p13 = pnand %p2546_p12, %p3016_p7  ;;  %p2555_p1 = por %p2554_p4, %p2553_p2 }
  0x35   : > { %p2549_p0 = pneg %p2548_p13 }
  0x37   : > { %p2556_p3 = pnand %p2555_p1, %p2549_p0 }
  0x39   : > { %2559 = shalt.err (!%p2556_p3)
}
  0x3a   : > { %s3524_s8 = smov 128   ;;  %s3526_s9 = smov 8  }
  0x3b   : > { %2382 = dma.hbm_to_vmem [thread:$0]  (!%p3002_p5), %s3570_s3, 512, %s294_s23, [#allocation11], %s3524_s8, %s3524_s8, %s3526_s9  }
  0x3c   : > { %s3572_s5 = sld [smem:[#allocation38_spill]] }
  0x42   : > { %s2560_s16 = scalar_lea.hbm %s3572_s5, 512 }
  0x43   : > { %p2561_p1 = scmp.ne.s32.totalorder %s3572_s5, %s2560_s16  ;;  %p2567_p8 = scmp.lt.u32.totalorder %s2560_s16, %s3572_s5 }
  0x45   : > { %p2563_p3 = pnand %p2561_p1, %p3016_p7 }
  0x47   : > { %p2564_p6 = pneg %p2563_p3 }
  0x49   : > { %p2569_p9 = pnand %p2567_p8, %p2564_p6 }
  0x4b   : > { %2572 = shalt.err (!%p2569_p9)
}
  0x4c   : > { %s2573_s23 = scalar_lea.vmem %s3006_s26, 512  ;;  %p2581_p13 = scmp.lt.s32.totalorder %s3006_s26, %s3006_s26 }
  0x4d   : > { %p2574_p10 = scmp.ne.s32.totalorder %s3006_s26, %s2573_s23  ;;  %p2582_p0 = scmp.lt.s32.totalorder %s2573_s23, %s2573_s23 }
  0x4f   : > { %p2576_p11 = pnand %p2574_p10, %p3016_p7  ;;  %p2583_p2 = por %p2582_p0, %p2581_p13 }
  0x51   : > { %p2577_p12 = pneg %p2576_p11 }
  0x53   : > { %p2584_p4 = pnand %p2583_p2, %p2577_p12 }
  0x55   : > { %2587 = shalt.err (!%p2584_p4)
}
  0x56   : > { %2388 = dma.hbm_to_vmem [thread:$0]  (!%p3002_p5), %s3572_s5, 512, %s3006_s26, [#allocation14], %s3524_s8, %s3524_s8, %s3526_s9  }
  0x57   : > { %p3529_p1 = scmp.eq.s32.totalorder %s2868_s19, 0  ;;  %p84_p3 = scmp.ne.s32.totalorder %s2836_s11, %s2832_s10 }
  0x58   : > { %p90_p6 = scmp.ne.s32.totalorder %s2832_s10, %s2828_s30  ;;  %p3528_p8 = scmp.lt.s32.totalorder %s2868_s19, 4 }
  0x59   : > { %p86_p9 = por %p84_p3, %p3529_p1  ;;  %s372_s16 = sand.u32 1, %s2868_s19  }
  0x5a   : > { %p3573_p10 = scmp.eq.s32.totalorder %s2989_s20, 0  ;;  %s374_s7 = sand.u32 1, %s2836_s11  }
  0x5b   : > { %s3523_s28 = sshll.u32 %s2864_s18, 8  ;;  %s3078_s29 = sshll.u32 %s374_s7, 4 }
  0x5c   : > { %p3072_p11 = por %p90_p6, %p3573_p10  ;;  %s3576_s1 = sld [smem:[#allocation35_spill]] }
  0x5d   : > { %p3089_p12 = pnand %p3528_p8, %p86_p9  ;;  %s376_s23 = scalar_lea.vmem [#allocation7], %s3078_s29 }
  0x5e   : > { %s3574_s21 = scalar_select %p3072_p11, 1, 0 }
  0x5f   : > { %s3577_s30 = scalar_select %p3089_p12, 1, 0 }
  0x60   : > { %3575 = sst [smem:[#allocation29_spill]] %s3574_s21  ;;  %s383_s0 = sshll.u32 %s376_s23, 4  ;;  %s3094_s0 = int_to_ptr.vmem [resolvable:$true] %s383_s0 }
  0x61   : > { %3578 = sst [smem:[#allocation30_spill]] %s3577_s30  ;;  %s3096_s15 = scalar_lea.sflag [#allocation8], %s372_s16 }
  0x62   : > { %s3085_s26 = scalar_lea.hbm %s3576_s1, %s3523_s28  ;;  %p3540_p0 = pneg %p3089_p12 }
  0x63   : > { %s2588_s7 = scalar_lea.hbm %s3085_s26, 256  ;;  %s2593_s28 = scalar_lea.hbm %s3576_s1, 512 }
  0x64   : > { %p2589_p13 = scmp.ne.s32.totalorder %s3085_s26, %s2588_s7  ;;  %p2594_p3 = scmp.lt.u32.totalorder %s3085_s26, %s3576_s1 }
  0x65   : > { %p2595_p6 = scmp.lt.u32.totalorder %s2593_s28, %s2588_s7  ;;  %p2597_p10 = scmp.lt.u32.totalorder %s2588_s7, %s3085_s26 }
  0x66   : > { %p2591_p2 = pnand %p3540_p0, %p2589_p13 }
  0x67   : > { %p2596_p9 = por %p2595_p6, %p2594_p3 }
  0x68   : > { %p2592_p4 = pneg %p2591_p2 }
  0x69   : > { %p2598_p8 = por %p2597_p10, %p2596_p9 }
  0x6b   : > { %p2599_p1 = pnand %p2598_p8, %p2592_p4 }
  0x6d   : > { %2602 = shalt.err (!%p2599_p1)
}
  0x6e   : > { %s2603_s16 = scalar_lea.vmem %s3094_s0, 256  ;;  %s2874_s23 = smov [#allocation7]  }
  0x6f   : > { %p2604_p13 = scmp.ne.s32.totalorder %s3094_s0, %s2603_s16  ;;  %s2608_s25 = sshll.u32 %s2874_s23, 4  ;;  %s2609_s25 = int_to_ptr.vmem [resolvable:$false] %s2608_s25 }
  0x70   : > { %s2610_s8 = scalar_lea.vmem %s2609_s25, 512  ;;  %p2611_p5 = scmp.lt.s32.totalorder %s3094_s0, %s2609_s25 }
  0x71   : > { %p2606_p2 = pnand %p2604_p13, %p3540_p0  ;;  %p2612_p3 = scmp.lt.s32.totalorder %s2610_s8, %s2603_s16 }
  0x73   : > { %p2607_p11 = pneg %p2606_p2  ;;  %p2613_p6 = por %p2612_p3, %p2611_p5 }
  0x75   : > { %p2614_p9 = pnand %p2613_p6, %p2607_p11 }
  0x77   : > { %2617 = shalt.err (!%p2614_p9)
}
  0x78   : > { %s3579_s9 = smov 8   ;;  %s3580_s28 = smov 128  }
  0x79   : > { %2398 = dma.hbm_to_vmem [thread:$0]  (!%p3089_p12), %s3085_s26, 256, %s3094_s0, %s3096_s15, %s3580_s28, %s3580_s28, %s3579_s9  }
  0x7a   : > { %s3581_s7 = sshll.u32 %s2864_s18, 8  ;;  %s397_s25 = scalar_lea.vmem [#allocation9], %s3078_s29 }
  0x7b   : > { %s3132_s16 = scalar_lea.hbm %s3510_s2, %s3581_s7  ;;  %s404_s8 = sshll.u32 %s397_s25, 4  ;;  %s3135_s8 = int_to_ptr.vmem [resolvable:$true] %s404_s8 }
  0x7c   : > { %s2875_s1 = smov [#allocation12]   ;;  %s2876_s5 = smov [#allocation15]  }
  0x7d   : > { %s306_s3 = sshll.u32 %s2875_s1, 4  ;;  %s332_s21 = sshll.u32 %s2876_s5, 4  ;;  %s307_s3 = int_to_ptr.vmem [resolvable:$true] %s306_s3  ;;  %s333_s21 = int_to_ptr.vmem [resolvable:$true] %s332_s21 }
  0x7e   : > { %s3582_s4 = sld [smem:[#allocation37_spill]] }
  0x84   : > { %s2618_s11 = scalar_lea.hbm %s3582_s4, 512 }
  0x85   : > { %p2619_p5 = scmp.ne.s32.totalorder %s3582_s4, %s2618_s11  ;;  %p2625_p11 = scmp.lt.u32.totalorder %s2618_s11, %s3582_s4 }
  0x87   : > { %p2621_p1 = pnand %p2619_p5, %p3016_p7 }
  0x89   : > { %p2622_p8 = pneg %p2621_p1 }
  0x8b   : > { %p2627_p4 = pnand %p2625_p11, %p2622_p8 }
  0x8d   : > { %2630 = shalt.err (!%p2627_p4)
}
  0x8e   : > { %s2631_s1 = scalar_lea.vmem %s307_s3, 512  ;;  %p2639_p3 = scmp.lt.s32.totalorder %s307_s3, %s307_s3 }
  0x8f   : > { %p2632_p10 = scmp.ne.s32.totalorder %s307_s3, %s2631_s1  ;;  %p2640_p6 = scmp.lt.s32.totalorder %s2631_s1, %s2631_s1 }
  0x91   : > { %p2634_p13 = pnand %p2632_p10, %p3016_p7  ;;  %p2641_p9 = por %p2640_p6, %p2639_p3 }
  0x93   : > { %p2635_p2 = pneg %p2634_p13 }
  0x95   : > { %p2642_p0 = pnand %p2641_p9, %p2635_p2 }
  0x97   : > { %2645 = shalt.err (!%p2642_p0)
}
  0x98   : > { %p3583_p5 = scmp.ne.s32.totalorder %s3569_s24, 0  ;;  %s3584_s6 = sld [smem:[#allocation39_spill]] }
  0x9a   : > { %2385 = dma.hbm_to_vmem [thread:$0]  (!%p3583_p5), %s3582_s4, 512, %s307_s3, [#allocation11], %s3580_s28, %s3580_s28, %s3579_s9  }
  0x9e   : > { %s2646_s27 = scalar_lea.hbm %s3584_s6, 512 }
  0x9f   : > { %p2647_p1 = scmp.ne.s32.totalorder %s3584_s6, %s2646_s27  ;;  %p2653_p11 = scmp.lt.u32.totalorder %s2646_s27, %s3584_s6 }
  0xa1   : > { %p2649_p0 = pnand %p2647_p1, %p3016_p7 }
  0xa3   : > { %p2650_p8 = pneg %p2649_p0 }
  0xa5   : > { %p2655_p4 = pnand %p2653_p11, %p2650_p8 }
  0xa7   : > { %2658 = shalt.err (!%p2655_p4)
}
  0xa8   : > { %s2659_s29 = scalar_lea.vmem %s333_s21, 512  ;;  %p2667_p3 = scmp.lt.s32.totalorder %s333_s21, %s333_s21 }
  0xa9   : > { %p2660_p10 = scmp.ne.s32.totalorder %s333_s21, %s2659_s29  ;;  %p2668_p6 = scmp.lt.s32.totalorder %s2659_s29, %s2659_s29 }
  0xab   : > { %p2662_p13 = pnand %p2660_p10, %p3016_p7  ;;  %p2669_p9 = por %p2668_p6, %p2667_p3 }
  0xad   : > { %p2663_p2 = pneg %p2662_p13 }
  0xaf   : > { %p2670_p12 = pnand %p2669_p9, %p2663_p2 }
  0xb1   : > { %2673 = shalt.err (!%p2670_p12)
}
  0xb2   : > { %s3585_s24 = sld [smem:[#allocation23_spill]]  ;;  %s2113_s22 = sadd.s32 4294967294, %s2868_s19  }
  0xb3   : > { %2391 = dma.hbm_to_vmem [thread:$0]  (!%p3583_p5), %s3584_s6, 512, %s333_s21, [#allocation14], %s3580_s28, %s3580_s28, %s3579_s9  }
  0xb4   : > { %s39_s1 = sadd.s32 1, %s2860_s17  ;;  %s42_s5 = sadd.s32 1, %s2864_s18 }
  0xb5   : > { %p40_p7 = scmp.ge.s32.totalorder %s39_s1, 2  ;;  %s51_s10 = sadd.s32 1, %s2848_s14 }
  0xb6   : > { %p58_p12 = scmp.ne.s32.totalorder %s2848_s14, %s2844_s13  ;;  %p64_p1 = scmp.ne.s32.totalorder %s2844_s13, %s2840_s12 }
  0xb7   : > { %s3638_s1 = smov (%p40_p7, %s39_s1), 0  ;;  %s3640_s5 = smov (!%p40_p7, %s42_s5), %s2864_s18 }
  0xb8   : > { %3586 = sst [smem:[#allocation31_spill]] %s3638_s1  ;;  %s47_s11 = ssub.s32 %s2860_s17, %s3638_s1 }
  0xb9   : > { %p3587_p0 = scmp.eq.s32.totalorder %s2868_s19, 0  ;;  %p44_p8 = scmp.ge.s32.totalorder %s3640_s5, 2 }
  0xba   : > { %p3589_p11 = scmp.eq.s32.totalorder %s2989_s20, 0  ;;  %s77_s27 = sadd.s32 1, %s3585_s24 }
  0xbb   : > { %p3194_p5 = por %p3587_p0, %p58_p12  ;;  %p268_p10 = scmp.eq.s32.totalorder %s2989_s20, 3 }
  0xbc   : > { %p3203_p4 = por %p3589_p11, %p64_p1  ;;  %s3642_s5 = smov (%p44_p8, %s3640_s5), 0 }
  0xbd   : > { %3591 = sst [smem:[#allocation32_spill]] %s3642_s5  ;;  %p3211_p13 = por %p268_p10, %p58_p12 }
  0xbe   : > { %s3590_s30 = scalar_select %p3203_p4, 1, 0 }
  0xbf   : > { %s3592_s23 = scalar_select %p3211_p13, 1, 0 }
  0xc0   : > { %p274_p2 = scmp.eq.s32.totalorder %s2113_s22, 3  ;;  %s46_s25 = ssub.s32 %s2864_s18, %s3642_s5 }
  0xc1   : > { %3593 = sst [smem:[#allocation33_spill]] %s3592_s23  ;;  %s352_s26 = sand.u32 1, %s2848_s14  }
  0xc2   : > { %s48_s0 = sor.u32 %s47_s11, %s46_s25  ;;  %p75_p3 = scmp.eq.s32.totalorder %s46_s25, 0 }
  0xc3   : > { %s3594_s29 = sld [smem:[#allocation30_spill]]  ;;  %p49_p6 = scmp.eq.s32.totalorder %s48_s0, 0 }
  0xc4   : > { %p3221_p9 = por %p274_p2, %p64_p1  ;;  %s3644_s24 = smov (!%p75_p3, %s3585_s24), %s77_s27 }
  0xc5   : > { %s3229_s7 = scalar_select %p49_p6, %s2848_s14, %s51_s10  }
  0xc6   : > { %s3595_s3 = scalar_select %p3221_p9, 1, 0 }
  0xc7   : > { %s2120_s22 = sshll.u32 %s352_s26, 3  ;;  %s2121_s4 = sshll.u32 %s2864_s18, 1 }
  0xc8   : > { %s361_s6 = sadd.s32 %s2860_s17, %s2121_s4  ;;  %s356_s11 = scalar_lea.vmem [#allocation4], %s2120_s22 }
  0xc9   : > { %s365_s5 = sshll.u32 %s356_s11, 4  ;;  %s2122_s25 = sshll.u32 %s361_s6, 7  ;;  %s3235_s5 = int_to_ptr.vmem [resolvable:$true] %s365_s5 }
  0xca   : > { %s3596_s12 = sld [smem:[#allocation34_spill]]  ;;  %p3598_p7 = scmp.lt.s32.totalorder %s2868_s19, 4 }
  0xcb   : > { %s2674_s27 = scalar_lea.hbm %s3132_s16, 256  ;;  %p3600_p0 = scmp.ne.s32.totalorder %s3594_s29, 0 }
  0xcc   : > { %p3246_p12 = pnand %p3598_p7, %p3194_p5  ;;  %p2675_p1 = scmp.ne.s32.totalorder %s3132_s16, %s2674_s27 }
  0xcd   : > { %p3601_p8 = pneg %p3600_p0  ;;  %s2679_s22 = scalar_lea.hbm %s3510_s2, 512 }
  0xce   : > { %p2680_p2 = scmp.lt.u32.totalorder %s3132_s16, %s3510_s2  ;;  %p2681_p3 = scmp.lt.u32.totalorder %s2679_s22, %s2674_s27 }
  0xcf   : > { %p2677_p11 = pnand %p2675_p1, %p3601_p8  ;;  %p2683_p5 = scmp.lt.u32.totalorder %s2674_s27, %s3132_s16 }
  0xd0   : > { %s3597_s23 = smov %s3596_s12  ;;  %s3240_s20 = scalar_lea.hbm %s3596_s12, %s2122_s25 }
  0xd1   : > { %p2678_p10 = pneg %p2677_p11  ;;  %p2682_p6 = por %p2681_p3, %p2680_p2 }
  0xd3   : > { %p2684_p7 = por %p2683_p5, %p2682_p6 }
  0xd5   : > { %p2685_p9 = pnand %p2684_p7, %p2678_p10 }
  0xd7   : > { %2688 = shalt.err (!%p2685_p9)
}
  0xd8   : > { %s2689_s12 = scalar_lea.vmem %s3135_s8, 256  ;;  %s2877_s21 = smov [#allocation9]  }
  0xd9   : > { %p2690_p1 = scmp.ne.s32.totalorder %s3135_s8, %s2689_s12  ;;  %s2694_s25 = sshll.u32 %s2877_s21, 4  ;;  %s2695_s25 = int_to_ptr.vmem [resolvable:$false] %s2694_s25 }
  0xda   : > { %s2696_s0 = scalar_lea.vmem %s2695_s25, 512  ;;  %p2697_p4 = scmp.lt.s32.totalorder %s3135_s8, %s2695_s25 }
  0xdb   : > { %p2692_p11 = pnand %p2690_p1, %p3601_p8  ;;  %p2698_p2 = scmp.lt.s32.totalorder %s2696_s0, %s2689_s12 }
  0xdd   : > { %p2693_p13 = pneg %p2692_p11  ;;  %p2699_p3 = por %p2698_p2, %p2697_p4 }
  0xdf   : > { %p2700_p6 = pnand %p2699_p3, %p2693_p13 }
  0xe1   : > { %2703 = shalt.err (!%p2700_p6)
}
  0xe2   : > { %2401 = dma.hbm_to_vmem [thread:$0]  (!%p3600_p0), %s3132_s16, 256, %s3135_s8, %s3096_s15, %s3580_s28, %s3580_s28, %s3579_s9  }
  0xe3   : > { %s353_s27 = scalar_lea.sflag [#allocation5], %s352_s26  ;;  %s2704_s4 = scalar_lea.hbm %s3240_s20, 128 }
  0xe4   : > { %p2705_p4 = scmp.ne.s32.totalorder %s3240_s20, %s2704_s4  ;;  %p2706_p13 = pneg %p3246_p12 }
  0xe5   : > { %s2709_s22 = scalar_lea.hbm %s3597_s23, 512  ;;  %p2710_p5 = scmp.lt.u32.totalorder %s3240_s20, %s3597_s23 }
  0xe6   : > { %p2707_p9 = pnand %p2706_p13, %p2705_p4  ;;  %p2711_p7 = scmp.lt.u32.totalorder %s2709_s22, %s2704_s4 }
  0xe7   : > { %p2713_p1 = scmp.lt.u32.totalorder %s2704_s4, %s3240_s20 }
  0xe8   : > { %p2708_p10 = pneg %p2707_p9  ;;  %p2712_p0 = por %p2711_p7, %p2710_p5 }
  0xea   : > { %p2714_p8 = por %p2713_p1, %p2712_p0 }
  0xec   : > { %p2715_p11 = pnand %p2714_p8, %p2708_p10 }
  0xee   : > { %2718 = shalt.err (!%p2715_p11)
}
  0xef   : > { %s2719_s15 = scalar_lea.vmem %s3235_s5, 128  ;;  %s2878_s9 = smov [#allocation4]  }
  0xf0   : > { %p2720_p2 = scmp.ne.s32.totalorder %s3235_s5, %s2719_s15  ;;  %s2724_s28 = sshll.u32 %s2878_s9, 4  ;;  %s2725_s28 = int_to_ptr.vmem [resolvable:$false] %s2724_s28 }
  0xf1   : > { %s2726_s16 = scalar_lea.vmem %s2725_s28, 256  ;;  %p2727_p4 = scmp.lt.s32.totalorder %s3235_s5, %s2725_s28 }
  0xf2   : > { %p2722_p3 = pnand %p2720_p2, %p2706_p13  ;;  %p2728_p9 = scmp.lt.s32.totalorder %s2726_s16, %s2719_s15 }
  0xf4   : > { %p2723_p6 = pneg %p2722_p3  ;;  %p2729_p5 = por %p2728_p9, %p2727_p4 }
  0xf6   : > { %p2730_p7 = pnand %p2729_p5, %p2723_p6 }
  0xf8   : > { %2733 = shalt.err (!%p2730_p7)
}
  0xf9   : > { %2395 = dma.hbm_to_vmem [thread:$0]  (!%p3246_p12), %s3240_s20, 128, %s3235_s5, %s353_s27  }
  0xfa   : > { %s3602_s8 = sld [smem:[#allocation28_spill]] }
 0x100   : > { %p3603_p10 = scmp.ne.s32.totalorder %s3602_s8, 0 }
 0x101   : > { %s3307_s26 = sand.u32 (!%p3603_p10), 1, %s2844_s13   ;;  %p3604_p13 = scmp.ne.s32.totalorder (!%p3603_p10), %s3590_s30, 0 }
 0x102   : > { %416 = sbr.rel (%p3603_p10) target bundleno = 2422 (0x976), region = 56  ;;  %s2130_s12 = sshll.u32 (!%p3603_p10), %s3307_s26, 3 }
 0x103   : > { %s419_s21 = scalar_lea.sflag (!%p3603_p10), [#allocation5], %s3307_s26  ;;  %s3311_s25 = scalar_lea.vmem (!%p3603_p10), [#allocation4], %s2130_s12 }
 0x109   : > { %2807 = dma.done.wait (%p3604_p13), %s419_s21, 128  }
 0x10a   : > { %2809 = vsyncadd (%p3604_p13), %s419_s21, 4294967168  ;;  %s3605_s10 = sld [smem:[#allocation27_spill]]  ;;  %s3606_s20 = sld [smem:[#allocation22_spill]] }
 0x10b   : > { %s3607_s5 = sld [smem:[#allocation29_spill]] }
 0x110   : > { %s427_s0 = sand.u32 1, %s3605_s10   ;;  %s429_s27 = sand.u32 1, %s3606_s20  }
 0x111   : > { %s2131_s4 = sshll.u32 %s429_s27, 4  ;;  %s428_s29 = scalar_lea.sflag [#allocation8], %s427_s0 }
 0x112   : > { %s431_s6 = scalar_lea.vmem [#allocation7], %s2131_s4  ;;  %p3608_p12 = scmp.ne.s32.totalorder %s3607_s5, 0 }
 0x114   : > { %2811 = dma.done.wait (%p3608_p12), %s428_s29, 512  }
 0x115   : > { %2813 = vsyncadd (%p3608_p12), %s428_s29, 4294966784  ;;  %s440_s22 = scalar_lea.vmem [#allocation9], %s2131_s4  ;;  %p3609_p0 = scmp.eq.s32.totalorder %s3605_s10, 0 }
 0x117   : > { %2815 = dma.done.wait (%p3609_p0), [#allocation11], 1024   ;;  %p3610_p1 = pmov %p3609_p0 }
 0x118   : > { %p3611_p8 = pmov %p3609_p0 }
 0x119   : > { %2817 = vsyncadd (%p3610_p1), [#allocation11], 4294966272 }
 0x11a   : > { %2819 = dma.done.wait (%p3611_p8), [#allocation14], 1024   ;;  %p3612_p11 = pmov %p3609_p0 }
 0x11b   : > { %s3331_s30 = scalar_lea.vmem [#allocation16], %s2130_s12  ;;  %s3613_s11 = sld [smem:[#allocation25_spill]] }
 0x11c   : > { %2821 = vsyncadd (%p3612_p11), [#allocation14], 4294966272 }
 0x121   : > { %p2138_p2 = scmp.ne.s32.totalorder %s3613_s11, 0 }
 0x122   : > { %v505_v0 = vld [vmem:[%s431_s6] sm:$0xff] (!%p2138_p2)  ;;  %v506_v1 = vld [vmem:[%s431_s6 + $0x8] sm:$0xff] (!%p2138_p2)  ;;  %vm513_vm0 = vcmask (!%p2138_p2), 261120   ;;  %vm861_vm2 = vcmask (!%p2138_p2), 130048   ;;  %vm852_vm3 = vcmask (!%p2138_p2), 64512  }
 0x123   : > { %504 = sbr.rel (%p2138_p2) target bundleno = 660 (0x294), region = 88  ;;  %v509_v2 = vld [vmem:[#allocation12] sm:$0xff] (!%p2138_p2)  ;;  %v2319_v3 = vpack.c.bf16 (!%p2138_p2), %v506_v1, %v505_v0  ;;  %vm2320_vm1 = vmpackc.low (!%p2138_p2), %vm513_vm0, %vm513_vm0  ;;  %v508_v5 = vld [vmem:[%s440_s22 + $0x8] sm:$0xff] (!%p2138_p2) }
 0x124   : > { %2236 = vmatprep.mubr.msk.f32.mxu0 (!%p2138_p2), %vm513_vm0, %v509_v2  ;;  %v507_v4 = vld [vmem:[%s440_s22] sm:$0xff] (!%p2138_p2)  ;;  %v510_v8 = vld [vmem:[#allocation12 + $0x8] sm:$0xff] (!%p2138_p2)  ;;  %v512_v12 = vld [vmem:[#allocation12 + $0x18] sm:$0xff] (!%p2138_p2) }
 0x125   : > { %2321 = vmatprep.subr.msk.bf16.mxu0 (!%p2138_p2), %vm2320_vm1, %v2319_v3  ;;  %v2325_v6 = vpack.c.bf16 (!%p2138_p2), %v508_v5, %v507_v4  ;;  %v617_v7 = vld [vmem:[#allocation13] sm:$0xff] (!%p2138_p2)  ;;  %v511_v9 = vld [vmem:[#allocation12 + $0x10] sm:$0xff] (!%p2138_p2)  ;;  %v618_v10 = vld [vmem:[#allocation13 + $0x8] sm:$0xff] (!%p2138_p2) }
 0x126   : > { %2324 = vmatpush3.bf16.xpose.msk.msra.mxu0 (!%p2138_p2), %vm2320_vm1, %v2319_v3  ;;  %2246 = vmatprep.mubr.msk.f32.mxu1 (!%p2138_p2), %vm513_vm0, %v617_v7  ;;  %v619_v11 = vld [vmem:[#allocation13 + $0x10] sm:$0xff] (!%p2138_p2)  ;;  %v620_v13 = vld [vmem:[#allocation13 + $0x18] sm:$0xff] (!%p2138_p2) }
 0x127   : > { %2327 = vmatprep.subr.msk.bf16.mxu1 (!%p2138_p2), %vm2320_vm1, %v2325_v6 }
 0x128   : > { %2330 = vmatpush3.bf16.xpose.msk.msra.mxu1 (!%p2138_p2), %vm2320_vm1, %v2325_v6 }
 0x12d   : > { %2237 = vmatmul.mubr.msk.f32.vlgmr.msra.gmra.mrb[0].mxu0 %vm513_vm0, %v510_v8 }
 0x12e   : > { %2239 = vmatprep.mubr.msk.f32.mxu0 %vm513_vm0, %v511_v9 }
 0x12f   : > { %2247 = vmatmul.mubr.msk.f32.vlgmr.msra.gmra.mrb[0].mxu1 %vm513_vm0, %v618_v10 }
 0x130   : > { %2249 = vmatprep.mubr.msk.f32.mxu1 %vm513_vm0, %v619_v11 }
 0x131   : > { %2240 = vmatmul.mubr.msk.f32.gmra.mrb[2].mxu0 %vm513_vm0, %v512_v12 }
 0x133   : > { %2250 = vmatmul.mubr.msk.f32.gmra.mrb[2].mxu1 %vm513_vm0, %v620_v13 }
 0x200   : > { %v2238_v14 = vpop.f32.mrb[0].mxu0 }
 0x201   : > { %v598_v15 = vpop.f32.mrb[1].mxu0 }
 0x202   : > { %724 = vxpose.xlu0.b32.start.end [1/1] (short) (narrow) %v598_v15, 16  ;;  %v2248_v18 = vpop.f32.mrb[0].mxu1 }
 0x203   : > { %863 = vst.msk [vmem:[#allocation3 + $0x8] sm:$0xff] %vm861_vm2, %v2248_v18  ;;  %v705_v19 = vpop.f32.mrb[1].mxu1 }
 0x204   : > { %v2241_v16 = vpop.f32.mrb[2].mxu0  ;;  %862 = vst.msk [vmem:[#allocation3] sm:$0xff] %vm861_vm2, %v705_v19 }
 0x205   : > { %v608_v17 = vpop.f32.mrb[3].mxu0 }
 0x206   : > { %788 = vxpose.xlu1.b32.start.end [1/1] (short) (narrow) %v608_v17, 16  ;;  %v2251_v20 = vpop.f32.mrb[2].mxu1 }
 0x207   : > { %756 = vxpose.xlu0.b32.start.end [1/1] (short) (narrow) %v2238_v14, 16  ;;  %865 = vst.msk [vmem:[#allocation3 + $0x18] sm:$0xff] %vm861_vm2, %v2251_v20  ;;  %v715_v21 = vpop.f32.mrb[3].mxu1 }
 0x208   : > { %864 = vst.msk [vmem:[#allocation3 + $0x10] sm:$0xff] %vm861_vm2, %v715_v21 }
 0x20b   : > { %820 = vxpose.xlu1.b32.start.end [1/1] (short) (narrow) %v2241_v16, 16 }
 0x282   : > { %v740_v22 = vpop.trf.xlu0 }
 0x283   : > { %853 = vst.msk [vmem:[#allocation2] sm:$0xff] %vm852_vm3, %v740_v22 }
 0x286   : > { %v804_v23 = vpop.trf.xlu1  ;;  %v741_v24 = vpop.trf.xlu0 }
 0x287   : > { %857 = vst.msk [vmem:[#allocation2 + $0x20] sm:$0xff] %vm852_vm3, %v804_v23  ;;  %854 = vst.msk [vmem:[#allocation2 + $0x8] sm:$0xff] %vm852_vm3, %v741_v24 }
 0x28a   : > { %v805_v25 = vpop.trf.xlu1  ;;  %v772_v26 = vpop.trf.xlu0 }
 0x28b   : > { %858 = vst.msk [vmem:[#allocation2 + $0x28] sm:$0xff] %vm852_vm3, %v805_v25  ;;  %855 = vst.msk [vmem:[#allocation2 + $0x10] sm:$0xff] %vm852_vm3, %v772_v26 }
 0x28e   : > { %v836_v27 = vpop.trf.xlu1  ;;  %v773_v28 = vpop.trf.xlu0 }
 0x28f   : > { %859 = vst.msk [vmem:[#allocation2 + $0x30] sm:$0xff] %vm852_vm3, %v836_v27  ;;  %856 = vst.msk [vmem:[#allocation2 + $0x18] sm:$0xff] %vm852_vm3, %v773_v28 }
 0x292   : > { %v837_v29 = vpop.trf.xlu1 }
 0x293   : > { %860 = vst.msk [vmem:[#allocation2 + $0x38] sm:$0xff] %vm852_vm3, %v837_v29 }
 0x294 PF: > { %v3353_v30 = vld [vmem:[%s3311_s25] sm:$0xff]  ;;  %vm871_vm4 = vcmask 261120   ;;  %v867_v31 = vld [vmem:[#allocation10] sm:$0xff]  ;;  %v868_v32 = vld [vmem:[#allocation10 + $0x8] sm:$0xff]  ;;  %vm1108_vm5 = vcmask 64512   ;;  %v2879_v38 = vmov 0.0|0.0  }
 0x295   : > { %2252 = vmatprep.subr.msk.mxu0 %vm871_vm4, %v3353_v30  ;;  %2254 = vmatprep.mubr.msk.f32.mxu0 %vm871_vm4, %v867_v31  ;;  %v869_v33 = vld [vmem:[#allocation10 + $0x10] sm:$0xff]  ;;  %v870_v34 = vld [vmem:[#allocation10 + $0x18] sm:$0xff]  ;;  %vm3366_vm6 = vmpackc.low %vm1108_vm5, %vm1108_vm5  ;;  %vm2880_vm7 = vmmov 0   ;;  %v2881_v43 = vmov 0.0   ;;  %vm1425_vm8 = vcmask 130048   ;;  %s3616_s1 = sld [smem:[#allocation26_spill]] }
 0x296   : > { %2253 = vmatpush3.xpose.msk.msra.mxu0 %vm871_vm4, %v3353_v30  ;;  %v1100_v35 = vld [vmem:[#allocation2] sm:$0xff]  ;;  %v1101_v36 = vld [vmem:[#allocation2 + $0x8] sm:$0xff]  ;;  %2339 = vmatprep.subr.bf16.mxu1 %v2879_v38  ;;  %v1102_v48 = vld [vmem:[#allocation2 + $0x10] sm:$0xff]  ;;  %s3617_s15 = sld [smem:[#allocation25_spill]]  ;;  %s3618_s28 = sld [smem:[#allocation33_spill]] }
 0x297   : > { %v1104_v37 = vld [vmem:[#allocation2 + $0x20] sm:$0xff]  ;;  %2331 = vmatprep.subr.bf16.mxu0 %v2879_v38  ;;  %v2332_v39 = vpack.c.bf16 %v1101_v36, %v1100_v35  ;;  %v1105_v41 = vld [vmem:[#allocation2 + $0x28] sm:$0xff]  ;;  %2278 = vmatprep.mubr.msk.f32.mxu1 %vm2880_vm7, %v2881_v43  ;;  %v1103_v49 = vld [vmem:[#allocation2 + $0x18] sm:$0xff]  ;;  %s3619_s21 = sld [smem:[#allocation40_spill]]  ;;  %s3620_s20 = sld [smem:[#allocation41_spill]] }
 0x298   : > { %v2340_v42 = vpack.c.bf16 %v1105_v41, %v1104_v37  ;;  %v2336_v50 = vpack.c.bf16 %v1103_v49, %v1102_v48  ;;  %v1106_v52 = vld [vmem:[#allocation2 + $0x30] sm:$0xff]  ;;  %v1471_v40 = vld [vmem:[#allocation3 + $0x8] sm:$0xff]  ;;  %vm2349_vm9 = vmpackc.low %vm871_vm4, %vm871_vm4  ;;  %s1946_s0 = sshll.u32 %s3331_s30, 4  ;;  %s3621_s29 = sld [smem:[#allocation42_spill]]  ;;  %s3445_s0 = int_to_ptr.vmem [resolvable:$true] %s1946_s0 }
 0x299   : > { %2255 = vmatmul.mubr.msk.f32.vlgmr.msra.gmra.mrb[0].mxu0 %vm871_vm4, %v868_v32  ;;  %v1470_v32 = vld [vmem:[#allocation3] sm:$0xff]  ;;  %v1472_v36 = vld [vmem:[#allocation3 + $0x10] sm:$0xff]  ;;  %v1813_v49 = vld [vmem:[#allocation15 + $0x18] sm:$0xff]  ;;  %s1931_s22 = scalar_lea.sflag [#allocation6], %s3307_s26  ;;  %s2734_s11 = scalar_lea.vmem %s3445_s0, 128 }
 0x29a   : > { %2257 = vmatprep.mubr.msk.f32.mxu0 %vm871_vm4, %v869_v33  ;;  %2334 = vmatpush3.bf16.xpose.msk.msra.mxu0 %vm3366_vm6, %v2332_v39  ;;  %v1107_v53 = vld [vmem:[#allocation2 + $0x38] sm:$0xff]  ;;  %v1812_v48 = vld [vmem:[#allocation15 + $0x10] sm:$0xff]  ;;  %p2735_p3 = scmp.ne.s32.totalorder %s3445_s0, %s2734_s11 }
 0x29b   : > { %2342 = vmatpush3.bf16.xpose.msk.msra.mxu1 %vm3366_vm6, %v2340_v42  ;;  %2335 = vmatprep.subr.bf16.mxu0 %v2879_v38  ;;  %v2344_v56 = vpack.c.bf16 %v1107_v53, %v1106_v52  ;;  %s2184_s9 = sshll.u32 %s3616_s1, 1  ;;  %s2882_s1 = smov [#allocation16]  }
 0x29c   : > { %2288 = vmatprep.subr.mxu1 %v2881_v43  ;;  %s1942_s16 = sadd.s32 %s3617_s15, %s2184_s9  ;;  %p3622_p6 = scmp.ne.s32.totalorder %s3618_s28, 0 }
 0x29d   : > { %2258 = vmatmul.mubr.msk.f32.gmra.mrb[2].mxu0 %vm871_vm4, %v870_v34  ;;  %s2185_s5 = sshll.u32 %s1942_s16, 7  ;;  %s2738_s15 = sshll.u32 %s2882_s1, 4  ;;  %s2739_s15 = int_to_ptr.vmem [resolvable:$false] %s2738_s15 }
 0x29e   : > { %2264 = vmatprep.mubr.msk.f32.mxu0 %vm2880_vm7, %v2881_v43  ;;  %s3443_s6 = scalar_lea.hbm %s3621_s29, %s2185_s5  ;;  %p2736_p4 = pnand %p2735_p3, %p3622_p6 }
 0x29f   : > { %s2740_s9 = scalar_lea.vmem %s2739_s15, 256  ;;  %p2741_p5 = scmp.lt.s32.totalorder %s3445_s0, %s2739_s15 }
 0x2a0   : > { %p2737_p9 = pneg %p2736_p4  ;;  %p2742_p7 = scmp.lt.s32.totalorder %s2740_s9, %s2734_s11 }
 0x2a2   : > { %p2743_p10 = por %p2742_p7, %p2741_p5 }
 0x2a4   : > { %p2744_p13 = pnand %p2743_p10, %p2737_p9 }
 0x36c   : > { %v2256_v44 = vpop.f32.mrb[0].mxu0 }
 0x36d   : > { %v953_v45 = vpop.f32.mrb[1].mxu0 }
 0x36e   : > { %972 = vxpose.xlu0.b32.start.end [1/1] (short) (narrow) %v953_v45, 8  ;;  %v1810_v45 = vld [vmem:[#allocation15] sm:$0xff] }
 0x370   : > { %v2259_v46 = vpop.f32.mrb[2].mxu0 }
 0x371   : > { %v963_v47 = vpop.f32.mrb[3].mxu0 }
 0x372   : > { %1004 = vxpose.xlu0.b32.start.end [1/1] (short) (narrow) %v2256_v44, 8  ;;  %1036 = vxpose.xlu1.b32.start.end [1/1] (short) (narrow) %v963_v47, 8  ;;  %v1473_v44 = vld [vmem:[#allocation3 + $0x18] sm:$0xff] }
 0x376   : > { %1068 = vxpose.xlu1.b32.start.end [1/1] (short) (narrow) %v2259_v46, 8  ;;  %v1811_v46 = vld [vmem:[#allocation15 + $0x8] sm:$0xff] }
 0x377   : > { %v2348_v47 = vpack.c.bf16 %v1811_v46, %v1810_v45 }
 0x3ee   : > { %v988_v51 = vpop.trf.xlu0 }
 0x3ef   : > { %2265 = vmatmul.mubr.msk.f32.vlgmr.msra.gmra.mrb[4].mxu0 %vm1108_vm5, %v988_v51 }
 0x3f0   : > { %2338 = vmatpush3.bf16.xpose.msk.msra.mxu0 %vm3366_vm6, %v2336_v50  ;;  %2271 = vmatprep.mubr.msk.f32.mxu0 %vm2880_vm7, %v2881_v43  ;;  %v2352_v50 = vpack.c.bf16 %v1813_v49, %v1812_v48 }
 0x3f1   : > { %2343 = vmatprep.subr.bf16.mxu0 %v2879_v38 }
 0x3f2   : > { %v1052_v54 = vpop.trf.xlu1  ;;  %v1020_v55 = vpop.trf.xlu0 }
 0x3f3   : > { %2279 = vmatmul.mubr.msk.f32.vlgmr.msra.gmra.mrb[0].mxu1 %vm1108_vm5, %v1052_v54 }
 0x3f4   : > { %2290 = vmatprep.mubr.msk.f32.mxu1 %vm2880_vm7, %v2881_v43 }
 0x3f6   : > { %v1084_v57 = vpop.trf.xlu1 }
 0x3f7   : > { %2272 = vmatmul.mubr.msk.f32.vlgmr.msra.gmra.mrb[6].mxu0 %vm1108_vm5, %v1020_v55 }
 0x3f8   : > { %2346 = vmatpush3.bf16.xpose.msk.msra.mxu0 %vm3366_vm6, %v2344_v56  ;;  %2285 = vmatprep.mubr.msk.f32.mxu0 %vm2880_vm7, %v2881_v43 }
 0x3f9   : > { %2293 = vmatprep.subr.mxu0 %v2881_v43 }
 0x3ff   : > { %2286 = vmatmul.mubr.msk.f32.vlgmr.msra.gmra.mrb[8].mxu0 %vm1108_vm5, %v1084_v57 }
 0x400   : > { %2295 = vmatprep.mubr.msk.f32.mxu0 %vm2880_vm7, %v2881_v43 }
 0x4c2   : > { %v1184_v58 = vpop.f32.mrb[4].mxu0 }
 0x4c3   : > { %v2266_v59 = vpop.f32.mrb[5].mxu0  ;;  %v1426_v60 = vsel %vm1425_vm8, %v1184_v58, -inf }
 0x4c4   : > { %1427 = vmax.xlane.f32.xlu0 %v1426_v60 }
 0x4c6   : > { %v1342_v61 = vpop.f32.mrb[0].mxu1 }
 0x4c7   : > { %v2280_v62 = vpop.f32.mrb[1].mxu1  ;;  %v1432_v63 = vsel %vm1425_vm8, %v1342_v61, -inf }
 0x4c8   : > { %1433 = vmax.xlane.f32.xlu1 %v1432_v63 }
 0x4ca   : > { %v1263_v0 = vpop.f32.mrb[6].mxu0 }
 0x4cb   : > { %v2273_v1 = vpop.f32.mrb[7].mxu0  ;;  %v1429_v2 = vsel %vm1425_vm8, %v1263_v0, -inf }
 0x4cc   : > { %1430 = vmax.xlane.f32.xlu1 %v1429_v2 }
 0x4d2   : > { %v1421_v3 = vpop.f32.mrb[8].mxu0 }
 0x4d3   : > { %v2287_v4 = vpop.f32.mrb[9].mxu0  ;;  %v1435_v5 = vsel %vm1425_vm8, %v1421_v3, -inf }
 0x4d4   : > { %1436 = vmax.xlane.f32.xlu1 %v1435_v5 }
 0x551   : > { %v1428_v6 = vpop.xlane.xlu0 %1427 }
 0x552   : > { %v1438_v7 = vsub.f32 %v1184_v58, %v1428_v6  ;;  %v2181_v6 = vld [vmem:[%s3619_s21] ss:$0 sm:$0xff] }
 0x554   : > { %v1442_v8 = vmul.f32 1.442695, %v1438_v7 }
 0x555   : > { %v1434_v9 = vpop.xlane.xlu1 %1433 }
 0x556   : > { %2514 = vpow2.f32 %v1442_v8  ;;  %v1440_v10 = vsub.f32 %v1342_v61, %v1434_v9  ;;  %v2182_v8 = vld [vmem:[%s3620_s20] ss:$0 sm:$0xff] }
 0x558   : > { %v1446_v11 = vmul.f32 1.442695, %v1440_v10 }
 0x559   : > { %v1431_v12 = vpop.xlane.xlu1 %1430 }
 0x55a   : > { %2516 = vpow2.f32 %v1446_v11  ;;  %v1439_v13 = vsub.f32 %v1263_v0, %v1431_v12 }
 0x55c   : > { %v1444_v14 = vmul.f32 1.442695, %v1439_v13 }
 0x55e   : > { %2518 = vpow2.f32 %v1444_v14 }
 0x560   : > { %v2515_v15 = vpop.eup %2514 }
 0x561   : > { %v1437_v16 = vpop.xlane.xlu1 %1436  ;;  %v1450_v17 = vsel %vm1425_vm8, %v2515_v15, 0.0 }
 0x562   : > { %v1441_v18 = vsub.f32 %v1421_v3, %v1437_v16  ;;  %1451 = vadd.xlane.f32.xlu0 %v1450_v17 }
 0x564   : > { %v2517_v19 = vpop.eup %2516  ;;  %v1448_v20 = vmul.f32 1.442695, %v1441_v18 }
 0x565   : > { %v1456_v21 = vsel %vm1425_vm8, %v2517_v19, 0.0 }
 0x566   : > { %2520 = vpow2.f32 %v1448_v20  ;;  %1457 = vadd.xlane.f32.xlu0 %v1456_v21 }
 0x568   : > { %v2519_v22 = vpop.eup %2518 }
 0x569   : > { %v1453_v23 = vsel %vm1425_vm8, %v2519_v22, 0.0 }
 0x56a   : > { %1454 = vadd.xlane.f32.xlu1 %v1453_v23 }
 0x570   : > { %v2521_v24 = vpop.eup %2520 }
 0x571   : > { %v1459_v25 = vsel %vm1425_vm8, %v2521_v24, 0.0 }
 0x572   : > { %1460 = vadd.xlane.f32.xlu1 %v1459_v25 }
 0x5ef   : > { %v1452_v26 = vpop.xlane.xlu0 %1451 }
 0x5f0   : > { %2522 = vrcp.f32 %v1452_v26 }
 0x5f3   : > { %v1458_v27 = vpop.xlane.xlu0 %1457 }
 0x5f4   : > { %2524 = vrcp.f32 %v1458_v27 }
 0x5f7   : > { %v1455_v28 = vpop.xlane.xlu1 %1454 }
 0x5f8   : > { %2526 = vrcp.f32 %v1455_v28 }
 0x5fa   : > { %v2523_v29 = vpop.eup %2522 }
 0x5fb   : > { %v1466_v31 = vmul.f32 %v2523_v29, %v2515_v15 }
 0x5fd   : > { %2289 = vmatpush3.xpose.msk.msra.mxu1 %vm1425_vm8, %v1466_v31 }
 0x5fe   : > { %v2525_v33 = vpop.eup %2524  ;;  %2298 = vmatprep.subr.mxu1 %v2881_v43 }
 0x5ff   : > { %v1468_v34 = vmul.f32 %v2525_v33, %v2517_v19  ;;  %v1461_v35 = vpop.xlane.xlu1 %1460 }
 0x600   : > { %2528 = vrcp.f32 %v1461_v35  ;;  %2291 = vmatmul.mubr.msk.f32.vlgmr.msra.gmra.mrb[2].mxu1 %vm1425_vm8, %v1470_v32 }
 0x601   : > { %2299 = vmatpush3.xpose.msk.msra.mxu1 %vm1425_vm8, %v1468_v34  ;;  %2300 = vmatprep.mubr.msk.f32.mxu1 %vm2880_vm7, %v2881_v43 }
 0x602   : > { %v2527_v37 = vpop.eup %2526  ;;  %2347 = vmatprep.subr.bf16.mxu1 %v2879_v38 }
 0x603   : > { %v1467_v39 = vmul.f32 %v2527_v37, %v2519_v22 }
 0x604   : > { %2301 = vmatmul.mubr.msk.f32.vlgmr.msra.gmra.mrb[4].mxu1 %vm1425_vm8, %v1472_v36 }
 0x605   : > { %2294 = vmatpush3.xpose.msk.msra.mxu0 %vm1425_vm8, %v1467_v39  ;;  %2316 = vmatprep.mubr.msk.f32.mxu1 %vm2880_vm7, %v2881_v43 }
 0x606   : > { %2303 = vmatprep.subr.mxu0 %v2881_v43  ;;  %2350 = vmatpush3.bf16.xpose.msk.msra.mxu1 %vm2349_vm9, %v2348_v47 }
 0x607   : > { %2351 = vmatprep.subr.bf16.mxu1 %v2879_v38 }
 0x608   : > { %2296 = vmatmul.mubr.msk.f32.vlgmr.msra.gmra.mrb[10].mxu0 %vm1425_vm8, %v1471_v40 }
 0x609   : > { %2305 = vmatprep.mubr.msk.f32.mxu0 %vm2880_vm7, %v2881_v43 }
 0x60a   : > { %v2529_v41 = vpop.eup %2528 }
 0x60b   : > { %v1469_v42 = vmul.f32 %v2529_v41, %v2521_v24 }
 0x60d   : > { %2304 = vmatpush3.xpose.msk.msra.mxu0 %vm1425_vm8, %v1469_v42 }
 0x60e   : > { %2354 = vmatpush3.bf16.xpose.msk.msra.mxu1 %vm2349_vm9, %v2352_v50 }
 0x610   : > { %2306 = vmatmul.mubr.msk.f32.vlgmr.msra.gmra.mrb[12].mxu0 %vm1425_vm8, %v1473_v44 }
 0x6d3   : > { %v1546_v43 = vpop.f32.mrb[2].mxu1 }
 0x6d4   : > { %1778 = vxpose.xlu0.b32.start [1/4] (short) (narrow) %v1546_v43, 8  ;;  %v2292_v51 = vpop.f32.mrb[3].mxu1 }
 0x6d7   : > { %v1698_v52 = vpop.f32.mrb[4].mxu1 }
 0x6d8   : > { %v2302_v53 = vpop.f32.mrb[5].mxu1 }
 0x6db   : > { %v1622_v54 = vpop.f32.mrb[10].mxu0 }
 0x6dc   : > { %1779 = vxpose.xlu0.b32.cont [2/4] (short) (narrow) %v1622_v54, 8  ;;  %v2297_v55 = vpop.f32.mrb[11].mxu0 }
 0x6e0   : > { %1780 = vxpose.xlu0.b32.cont [3/4] (short) (narrow) %v1698_v52, 8 }
 0x6e3   : > { %v1774_v56 = vpop.f32.mrb[12].mxu0 }
 0x6e4   : > { %1781 = vxpose.xlu0.b32.end [4/4] (short) (narrow) %v1774_v56, 8  ;;  %v2307_v57 = vpop.f32.mrb[13].mxu0 }
 0x758   : > { %v1794_v58 = vpop.trf.xlu0 }
 0x759   : > { %2317 = vmatmul.mubr.msk.f32.vlgmr.msra.gmra.mrb[6].mxu1 %vm871_vm4, %v1794_v58 }
 0x82c   : > { %v1895_v38 = vpop.f32.mrb[6].mxu1 }
 0x82d   : > { %v1896_v59 = vadd.f32 %v1895_v38, %v3353_v30  ;;  %v2318_v60 = vpop.f32.mrb[7].mxu1 }
 0x82f   : > { %v1899_v61 = vsel %vm871_vm4, %v1896_v59, 0.0 }
 0x830   : > { %1900 = vadd.xlane.f32.xlu1 %v1899_v61 }
 0x8bd   : > { %v1901_v62 = vpop.xlane.xlu1 %1900 }
 0x8be   : > { %v1903_v63 = vmul.f32 0.03125, %v1901_v62 }
 0x8c0   : > { %v1904_v0 = vsub.f32 %v1896_v59, %v1903_v63 }
 0x8c2   : > { %v1905_v1 = vmul.f32 %v1904_v0, %v1904_v0 }
 0x8c4   : > { %v1906_v2 = vsel %vm871_vm4, %v1905_v1, 0.0 }
 0x8c5   : > { %1907 = vadd.xlane.f32.xlu1 %v1906_v2 }
 0x952   : > { %v1908_v3 = vpop.xlane.xlu1 %1907 }
 0x953   : > { %v1909_v4 = vmul.f32 0.03125, %v1908_v3 }
 0x955   : > { %v1910_v5 = vadd.f32 1e-06, %v1909_v4 }
 0x957   : > { %2530 = vrsqrt.f32 %v1910_v5 }
 0x961   : > { %v2531_v30 = vpop.eup %2530 }
 0x962   : > { %v1912_v7 = vmul.f32 %v2531_v30, %v1904_v0 }
 0x964   : > { %v1920_v9 = vmul.f32 %v2181_v6, %v1912_v7 }
 0x966   : > { %v1928_v10 = vadd.f32 %v2182_v8, %v1920_v9 }
 0x968   : > { %1929 = vst.msk [vmem:[%s3331_s30] sm:$0xff] %vm871_vm4, %v1928_v10 }
 0x969   : > { %2747 = shalt.err (!%p2744_p13)
}
 0x96a   : > { %s2748_s26 = scalar_lea.hbm %s3443_s6, 128  ;;  %s2752_s8 = scalar_lea.hbm %s3621_s29, 512 }
 0x96b   : > { %p2749_p12 = scmp.ne.s32.totalorder %s3443_s6, %s2748_s26  ;;  %p2753_p8 = scmp.lt.u32.totalorder %s3443_s6, %s3621_s29 }
 0x96c   : > { %p2754_p11 = scmp.lt.u32.totalorder %s2752_s8, %s2748_s26  ;;  %p2756_p3 = scmp.lt.u32.totalorder %s2748_s26, %s3443_s6 }
 0x96d   : > { %p2750_p0 = pnand %p2749_p12, %p3622_p6 }
 0x96e   : > { %p2755_p2 = por %p2754_p11, %p2753_p8 }
 0x96f   : > { %p2751_p1 = pneg %p2750_p0 }
 0x970   : > { %p2757_p4 = por %p2756_p3, %p2755_p2 }
 0x972   : > { %p2758_p9 = pnand %p2757_p4, %p2751_p1 }
 0x974   : > { %2761 = shalt.err (!%p2758_p9)
}
 0x975   : > { %2377 = dma.vmem_to_hbm [thread:$0]  (%p3622_p6), %s3445_s0, 128, %s3443_s6, %s1931_s22  }
 0x976 PF: > { %s3623_s25 = sld [smem:[#allocation24_spill]]  ;;  %p2415_p5 = scmp.ge.s32.totalorder %s2868_s19, 2 }
 0x977   : > { %p3624_p7 = scmp.ne.s32.totalorder %s3595_s3, 0 }
 0x979   : > { %p2403_p10 = pnand %p2415_p5, %p3624_p7 }
 0x97c   : > { %s1958_s10 = sand.u32 1, %s3623_s25  }
 0x97d   : > { %s1959_s20 = scalar_lea.sflag [#allocation6], %s1958_s10 }
 0x97e   : > { %2823 = dma.done.wait (!%p2403_p10), %s1959_s20, 128  }
 0x97f   : > { %2825 = vsyncadd (!%p2403_p10), %s1959_s20, 4294967168  ;;  %s30_s19 = sadd.s32 1, %s2868_s19   ;;  %s3625_s30 = sld [smem:[#allocation22_spill]] }
 0x980   : > { %p27_p13 = scmp.ge.s32.totalorder %s30_s19, 6   ;;  %s3626_s10 = sld [smem:[#allocation23_spill]] }
 0x981   : > { %s3627_s28 = sld [smem:[#allocation31_spill]]  ;;  %s3628_s5 = sld [smem:[#allocation32_spill]] }
 0x982   : > { %s3629_s11 = smov %s3644_s24  ;;  %s3630_s12 = smov %s2844_s13 }
 0x983   : > { %s3631_s13 = smov %s2848_s14  ;;  %s3632_s14 = smov %s3229_s7 }
 0x984   : > { %s3633_s15 = smov %s2860_s17  ;;  %s3634_s16 = smov %s2864_s18 }
 0x985   :  { %29 = sbr.rel (!%p27_p13) target bundleno = 23 (0x17), region = 145 }
 0x987   : > { %s3635_s17 = smov %s3627_s28  ;;  %s3636_s18 = smov %s3628_s5 }
 0x98c   :  { %1964 = vsyncpa [#allocation5], 1 }
 0x98d   :  { %1966 = vsyncpa [#allocation5 + $0x1], 1 }
 0x98e   :  { %1967 = vsyncpa [#allocation8], 1 }
 0x98f   :  { %1969 = vsyncpa [#allocation8 + $0x1], 1 }
 0x990   :  { %1970 = vsyncpa [#allocation11], 1 }
 0x991   :  { %1971 = vsyncpa [#allocation14], 1 }
 0x992   :  { %1972 = vsyncpa [#allocation6], 1 }
 0x993   :  { %1974 = vsyncpa [#allocation6 + $0x1], 1 }

// kernel: tpu_custom_call.1
= control target key start
LH: loop header
LB: loop body
LE: loop exit
PB: predicated region body
PF: predicated region fallthrough
CT: control target
= control target key end

     0   :  { %s3508_s0 = inlined_call_operand.hbm [shape: f32[2,16,32], index: 0, kind: input, shape index: {}]   ;;  %s3509_s1 = inlined_call_operand.hbm [shape: f32[2,16,32], index: 1, kind: input, shape index: {}]   ;;  %s3510_s2 = inlined_call_operand.hbm [shape: f32[2,16,32], index: 2, kind: input, shape index: {}]   ;;  %s3511_s3 = inlined_call_operand.hbm [shape: f32[32,32], index: 3, kind: input, shape index: {}]   ;;  %s3512_s4 = inlined_call_operand.hbm [shape: f32[32,32], index: 4, kind: input, shape index: {}]   ;;  %s3513_s5 = inlined_call_operand.hbm [shape: f32[32,32], index: 5, kind: input, shape index: {}]   ;;  %s3514_s6 = inlined_call_operand.hbm [shape: f32[32,32], index: 6, kind: input, shape index: {}]   ;;  %s3515_s7 = inlined_call_operand.vmem [shape: f32[1,32], index: 7, kind: input, shape index: {}]   ;;  %s3516_s8 = inlined_call_operand.vmem [shape: f32[1,32], index: 8, kind: input, shape index: {}]   ;;  %s3517_s9 = inlined_call_operand.hbm [shape: f32[2,16,32], index: 9, kind: output, shape index: {}]  }
   0x1   :  { %3552 = sst [smem:[#allocation34_spill]] %s3508_s0 }
   0x2   :  { %3553 = sst [smem:[#allocation35_spill]] %s3509_s1 }
   0x3   :  { %3554 = sst [smem:[#allocation36_spill]] %s3511_s3 }
   0x4   :  { %3555 = sst [smem:[#allocation37_spill]] %s3512_s4 }
   0x5   :  { %3556 = sst [smem:[#allocation38_spill]] %s3513_s5 }
   0x6   :  { %3557 = sst [smem:[#allocation39_spill]] %s3514_s6 }
   0x7   :  { %3558 = sst [smem:[#allocation40_spill]] %s3515_s7 }
   0x8   :  { %3559 = sst [smem:[#allocation41_spill]] %s3516_s8 }
   0x9   :  { %3560 = sst [smem:[#allocation42_spill]] %s3517_s9 }
   0xa   :  { %14 = vsyncpa [#allocation5], 0 }
   0xb   :  { %16 = vsyncpa [#allocation5 + $0x1], 0 }
   0xc   :  { %17 = vsyncpa [#allocation8], 0 }
   0xd   :  { %19 = vsyncpa [#allocation8 + $0x1], 0 }
   0xe   :  { %20 = vsyncpa [#allocation11], 0 }
   0xf   :  { %21 = vsyncpa [#allocation14], 0 }
  0x10   :  { %22 = vsyncpa [#allocation6], 0 }
  0x11   :  { %24 = vsyncpa [#allocation6 + $0x1], 0  ;;  %s2933_s30 = smov 0   ;;  %s2935_s10 = smov 0  }
  0x12   :  { %s2937_s11 = smov 0   ;;  %s2939_s12 = smov 0  }
  0x13   :  { %s2941_s13 = smov 0   ;;  %s2943_s14 = smov 0  }
  0x14   :  { %s2945_s15 = smov 0   ;;  %s2947_s16 = smov 0  }
  0x15   :  { %s2949_s17 = smov 0   ;;  %s2951_s18 = smov 0  }
  0x16   :  { %s2953_s19 = smov 0  }
  0x17 LB: > { %3561 = sst [smem:[#allocation22_spill]] %s2832_s10  ;;  %s2989_s20 = sadd.s32 4294967295, %s2868_s19   ;;  %s2868_s19 = sphi %s2953_s19, %s30_s19   ;;  %s2864_s18 = sphi %s2951_s18, %s3636_s18   ;;  %s2860_s17 = sphi %s2949_s17, %s3635_s17   ;;  %s2856_s16 = sphi %s2947_s16, %s3634_s16   ;;  %s2852_s15 = sphi %s2945_s15, %s3633_s15   ;;  %s2848_s14 = sphi %s2943_s14, %s3632_s14   ;;  %s2844_s13 = sphi %s2941_s13, %s3631_s13   ;;  %s2840_s12 = sphi %s2939_s12, %s3630_s12   ;;  %s2836_s11 = sphi %s2937_s11, %s3629_s11   ;;  %s2832_s10 = sphi %s2935_s10, %s3626_s10   ;;  %s2828_s30 = sphi %s2933_s30, %s3625_s30  }
  0x18   : > { %3562 = sst [smem:[#allocation23_spill]] %s2836_s11  ;;  %p2114_p0 = scmp.ge.s32.totalorder %s2868_s19, 1 }
  0x19   : > { %3563 = sst [smem:[#allocation24_spill]] %s2840_s12  ;;  %p3519_p1 = scmp.eq.s32.totalorder %s2989_s20, 0 }
  0x1a   : > { %3564 = sst [smem:[#allocation25_spill]] %s2852_s15  ;;  %p281_p2 = scmp.lt.s32.totalorder %s2868_s19, 5 }
  0x1b   : > { %3565 = sst [smem:[#allocation26_spill]] %s2856_s16  ;;  %s2870_s22 = smov [#allocation10]  }
  0x1c   : > { %3566 = sst [smem:[#allocation27_spill]] %s2989_s20  ;;  %p2994_p3 = pnand %p2114_p0, %p281_p2 }
  0x1d   : > { %s293_s23 = sshll.u32 %s2870_s22, 4  ;;  %s2871_s25 = smov [#allocation13]   ;;  %s294_s23 = int_to_ptr.vmem [resolvable:$true] %s293_s23 }
  0x1e   : > { %s3567_s21 = scalar_select %p2994_p3, 1, 0 }
  0x1f   : > { %p2379_p4 = pneg %p2994_p3  ;;  %s319_s26 = sshll.u32 %s2871_s25, 4  ;;  %s3006_s26 = int_to_ptr.vmem [resolvable:$true] %s319_s26 }
  0x20   : > { %3568 = sst [smem:[#allocation28_spill]] %s3567_s21  ;;  %s3570_s3 = sld [smem:[#allocation36_spill]] }
  0x21   : > { %p3002_p5 = pnand %p2379_p4, %p3519_p1 }
  0x23   : > { %s3569_s24 = scalar_select %p3002_p5, 1, 0 }
  0x24   : > { %p3016_p7 = pneg %p3002_p5 }
  0x26   : > { %s2532_s29 = scalar_lea.hbm %s3570_s3, 512 }
  0x27   : > { %p2533_p6 = scmp.ne.s32.totalorder %s3570_s3, %s2532_s29  ;;  %p2539_p10 = scmp.lt.u32.totalorder %s2532_s29, %s3570_s3 }
  0x29   : > { %p2535_p8 = pnand %p3016_p7, %p2533_p6 }
  0x2b   : > { %p2536_p9 = pneg %p2535_p8 }
  0x2d   : > { %p2541_p11 = pnand %p2539_p10, %p2536_p9 }
  0x2f   : > { %2544 = shalt.err (!%p2541_p11)
}
  0x30   : > { %s2545_s27 = scalar_lea.vmem %s294_s23, 512  ;;  %p2553_p2 = scmp.lt.s32.totalorder %s294_s23, %s294_s23 }
  0x31   : > { %p2546_p12 = scmp.ne.s32.totalorder %s294_s23, %s2545_s27  ;;  %p2554_p4 = scmp.lt.s32.totalorder %s2545_s27, %s2545_s27 }
  0x33   : > { %p2548_p13 = pnand %p2546_p12, %p3016_p7  ;;  %p2555_p1 = por %p2554_p4, %p2553_p2 }
  0x35   : > { %p2549_p0 = pneg %p2548_p13 }
  0x37   : > { %p2556_p3 = pnand %p2555_p1, %p2549_p0 }
  0x39   : > { %2559 = shalt.err (!%p2556_p3)
}
  0x3a   : > { %s3524_s8 = smov 128   ;;  %s3526_s9 = smov 8  }
  0x3b   : > { %2382 = dma.hbm_to_vmem [thread:$0]  (!%p3002_p5), %s3570_s3, 512, %s294_s23, [#allocation11], %s3524_s8, %s3524_s8, %s3526_s9  }
  0x3c   : > { %s3572_s5 = sld [smem:[#allocation38_spill]] }
  0x42   : > { %s2560_s16 = scalar_lea.hbm %s3572_s5, 512 }
  0x43   : > { %p2561_p1 = scmp.ne.s32.totalorder %s3572_s5, %s2560_s16  ;;  %p2567_p8 = scmp.lt.u32.totalorder %s2560_s16, %s3572_s5 }
  0x45   : > { %p2563_p3 = pnand %p2561_p1, %p3016_p7 }
  0x47   : > { %p2564_p6 = pneg %p2563_p3 }
  0x49   : > { %p2569_p9 = pnand %p2567_p8, %p2564_p6 }
  0x4b   : > { %2572 = shalt.err (!%p2569_p9)
}
  0x4c   : > { %s2573_s23 = scalar_lea.vmem %s3006_s26, 512  ;;  %p2581_p13 = scmp.lt.s32.totalorder %s3006_s26, %s3006_s26 }
  0x4d   : > { %p2574_p10 = scmp.ne.s32.totalorder %s3006_s26, %s2573_s23  ;;  %p2582_p0 = scmp.lt.s32.totalorder %s2573_s23, %s2573_s23 }
  0x4f   : > { %p2576_p11 = pnand %p2574_p10, %p3016_p7  ;;  %p2583_p2 = por %p2582_p0, %p2581_p13 }
  0x51   : > { %p2577_p12 = pneg %p2576_p11 }
  0x53   : > { %p2584_p4 = pnand %p2583_p2, %p2577_p12 }
  0x55   : > { %2587 = shalt.err (!%p2584_p4)
}
  0x56   : > { %2388 = dma.hbm_to_vmem [thread:$0]  (!%p3002_p5), %s3572_s5, 512, %s3006_s26, [#allocation14], %s3524_s8, %s3524_s8, %s3526_s9  }
  0x57   : > { %p3529_p1 = scmp.eq.s32.totalorder %s2868_s19, 0  ;;  %p84_p3 = scmp.ne.s32.totalorder %s2836_s11, %s2832_s10 }
  0x58   : > { %p90_p6 = scmp.ne.s32.totalorder %s2832_s10, %s2828_s30  ;;  %p3528_p8 = scmp.lt.s32.totalorder %s2868_s19, 4 }
  0x59   : > { %p86_p9 = por %p84_p3, %p3529_p1  ;;  %s372_s16 = sand.u32 1, %s2868_s19  }
  0x5a   : > { %p3573_p10 = scmp.eq.s32.totalorder %s2989_s20, 0  ;;  %s374_s7 = sand.u32 1, %s2836_s11  }
  0x5b   : > { %s3523_s28 = sshll.u32 %s2864_s18, 8  ;;  %s3078_s29 = sshll.u32 %s374_s7, 4 }
  0x5c   : > { %p3072_p11 = por %p90_p6, %p3573_p10  ;;  %s3576_s1 = sld [smem:[#allocation35_spill]] }
  0x5d   : > { %p3089_p12 = pnand %p3528_p8, %p86_p9  ;;  %s376_s23 = scalar_lea.vmem [#allocation7], %s3078_s29 }
  0x5e   : > { %s3574_s21 = scalar_select %p3072_p11, 1, 0 }
  0x5f   : > { %s3577_s30 = scalar_select %p3089_p12, 1, 0 }
  0x60   : > { %3575 = sst [smem:[#allocation29_spill]] %s3574_s21  ;;  %s383_s0 = sshll.u32 %s376_s23, 4  ;;  %s3094_s0 = int_to_ptr.vmem [resolvable:$true] %s383_s0 }
  0x61   : > { %3578 = sst [smem:[#allocation30_spill]] %s3577_s30  ;;  %s3096_s15 = scalar_lea.sflag [#allocation8], %s372_s16 }
  0x62   : > { %s3085_s26 = scalar_lea.hbm %s3576_s1, %s3523_s28  ;;  %p3540_p0 = pneg %p3089_p12 }
  0x63   : > { %s2588_s7 = scalar_lea.hbm %s3085_s26, 256  ;;  %s2593_s28 = scalar_lea.hbm %s3576_s1, 512 }
  0x64   : > { %p2589_p13 = scmp.ne.s32.totalorder %s3085_s26, %s2588_s7  ;;  %p2594_p3 = scmp.lt.u32.totalorder %s3085_s26, %s3576_s1 }
  0x65   : > { %p2595_p6 = scmp.lt.u32.totalorder %s2593_s28, %s2588_s7  ;;  %p2597_p10 = scmp.lt.u32.totalorder %s2588_s7, %s3085_s26 }
  0x66   : > { %p2591_p2 = pnand %p3540_p0, %p2589_p13 }
  0x67   : > { %p2596_p9 = por %p2595_p6, %p2594_p3 }
  0x68   : > { %p2592_p4 = pneg %p2591_p2 }
  0x69   : > { %p2598_p8 = por %p2597_p10, %p2596_p9 }
  0x6b   : > { %p2599_p1 = pnand %p2598_p8, %p2592_p4 }
  0x6d   : > { %2602 = shalt.err (!%p2599_p1)
}
  0x6e   : > { %s2603_s16 = scalar_lea.vmem %s3094_s0, 256  ;;  %s2874_s23 = smov [#allocation7]  }
  0x6f   : > { %p2604_p13 = scmp.ne.s32.totalorder %s3094_s0, %s2603_s16  ;;  %s2608_s25 = sshll.u32 %s2874_s23, 4  ;;  %s2609_s25 = int_to_ptr.vmem [resolvable:$false] %s2608_s25 }
  0x70   : > { %s2610_s8 = scalar_lea.vmem %s2609_s25, 512  ;;  %p2611_p5 = scmp.lt.s32.totalorder %s3094_s0, %s2609_s25 }
  0x71   : > { %p2606_p2 = pnand %p2604_p13, %p3540_p0  ;;  %p2612_p3 = scmp.lt.s32.totalorder %s2610_s8, %s2603_s16 }
  0x73   : > { %p2607_p11 = pneg %p2606_p2  ;;  %p2613_p6 = por %p2612_p3, %p2611_p5 }
  0x75   : > { %p2614_p9 = pnand %p2613_p6, %p2607_p11 }
  0x77   : > { %2617 = shalt.err (!%p2614_p9)
}
  0x78   : > { %s3579_s9 = smov 8   ;;  %s3580_s28 = smov 128  }
  0x79   : > { %2398 = dma.hbm_to_vmem [thread:$0]  (!%p3089_p12), %s3085_s26, 256, %s3094_s0, %s3096_s15, %s3580_s28, %s3580_s28, %s3579_s9  }
  0x7a   : > { %s3581_s7 = sshll.u32 %s2864_s18, 8  ;;  %s397_s25 = scalar_lea.vmem [#allocation9], %s3078_s29 }
  0x7b   : > { %s3132_s16 = scalar_lea.hbm %s3510_s2, %s3581_s7  ;;  %s404_s8 = sshll.u32 %s397_s25, 4  ;;  %s3135_s8 = int_to_ptr.vmem [resolvable:$true] %s404_s8 }
  0x7c   : > { %s2875_s1 = smov [#allocation12]   ;;  %s2876_s5 = smov [#allocation15]  }
  0x7d   : > { %s306_s3 = sshll.u32 %s2875_s1, 4  ;;  %s332_s21 = sshll.u32 %s2876_s5, 4  ;;  %s307_s3 = int_to_ptr.vmem [resolvable:$true] %s306_s3  ;;  %s333_s21 = int_to_ptr.vmem [resolvable:$true] %s332_s21 }
  0x7e   : > { %s3582_s4 = sld [smem:[#allocation37_spill]] }
  0x84   : > { %s2618_s11 = scalar_lea.hbm %s3582_s4, 512 }
  0x85   : > { %p2619_p5 = scmp.ne.s32.totalorder %s3582_s4, %s2618_s11  ;;  %p2625_p11 = scmp.lt.u32.totalorder %s2618_s11, %s3582_s4 }
  0x87   : > { %p2621_p1 = pnand %p2619_p5, %p3016_p7 }
  0x89   : > { %p2622_p8 = pneg %p2621_p1 }
  0x8b   : > { %p2627_p4 = pnand %p2625_p11, %p2622_p8 }
  0x8d   : > { %2630 = shalt.err (!%p2627_p4)
}
  0x8e   : > { %s2631_s1 = scalar_lea.vmem %s307_s3, 512  ;;  %p2639_p3 = scmp.lt.s32.totalorder %s307_s3, %s307_s3 }
  0x8f   : > { %p2632_p10 = scmp.ne.s32.totalorder %s307_s3, %s2631_s1  ;;  %p2640_p6 = scmp.lt.s32.totalorder %s2631_s1, %s2631_s1 }
  0x91   : > { %p2634_p13 = pnand %p2632_p10, %p3016_p7  ;;  %p2641_p9 = por %p2640_p6, %p2639_p3 }
  0x93   : > { %p2635_p2 = pneg %p2634_p13 }
  0x95   : > { %p2642_p0 = pnand %p2641_p9, %p2635_p2 }
  0x97   : > { %2645 = shalt.err (!%p2642_p0)
}
  0x98   : > { %p3583_p5 = scmp.ne.s32.totalorder %s3569_s24, 0  ;;  %s3584_s6 = sld [smem:[#allocation39_spill]] }
  0x9a   : > { %2385 = dma.hbm_to_vmem [thread:$0]  (!%p3583_p5), %s3582_s4, 512, %s307_s3, [#allocation11], %s3580_s28, %s3580_s28, %s3579_s9  }
  0x9e   : > { %s2646_s27 = scalar_lea.hbm %s3584_s6, 512 }
  0x9f   : > { %p2647_p1 = scmp.ne.s32.totalorder %s3584_s6, %s2646_s27  ;;  %p2653_p11 = scmp.lt.u32.totalorder %s2646_s27, %s3584_s6 }
  0xa1   : > { %p2649_p0 = pnand %p2647_p1, %p3016_p7 }
  0xa3   : > { %p2650_p8 = pneg %p2649_p0 }
  0xa5   : > { %p2655_p4 = pnand %p2653_p11, %p2650_p8 }
  0xa7   : > { %2658 = shalt.err (!%p2655_p4)
}
  0xa8   : > { %s2659_s29 = scalar_lea.vmem %s333_s21, 512  ;;  %p2667_p3 = scmp.lt.s32.totalorder %s333_s21, %s333_s21 }
  0xa9   : > { %p2660_p10 = scmp.ne.s32.totalorder %s333_s21, %s2659_s29  ;;  %p2668_p6 = scmp.lt.s32.totalorder %s2659_s29, %s2659_s29 }
  0xab   : > { %p2662_p13 = pnand %p2660_p10, %p3016_p7  ;;  %p2669_p9 = por %p2668_p6, %p2667_p3 }
  0xad   : > { %p2663_p2 = pneg %p2662_p13 }
  0xaf   : > { %p2670_p12 = pnand %p2669_p9, %p2663_p2 }
  0xb1   : > { %2673 = shalt.err (!%p2670_p12)
}
  0xb2   : > { %s3585_s24 = sld [smem:[#allocation23_spill]]  ;;  %s2113_s22 = sadd.s32 4294967294, %s2868_s19  }
  0xb3   : > { %2391 = dma.hbm_to_vmem [thread:$0]  (!%p3583_p5), %s3584_s6, 512, %s333_s21, [#allocation14], %s3580_s28, %s3580_s28, %s3579_s9  }
  0xb4   : > { %s39_s1 = sadd.s32 1, %s2860_s17  ;;  %s42_s5 = sadd.s32 1, %s2864_s18 }
  0xb5   : > { %p40_p7 = scmp.ge.s32.totalorder %s39_s1, 2  ;;  %s51_s10 = sadd.s32 1, %s2848_s14 }
  0xb6   : > { %p58_p12 = scmp.ne.s32.totalorder %s2848_s14, %s2844_s13  ;;  %p64_p1 = scmp.ne.s32.totalorder %s2844_s13, %s2840_s12 }
  0xb7   : > { %s3638_s1 = smov (%p40_p7, %s39_s1), 0  ;;  %s3640_s5 = smov (!%p40_p7, %s42_s5), %s2864_s18 }
  0xb8   : > { %3586 = sst [smem:[#allocation31_spill]] %s3638_s1  ;;  %s47_s11 = ssub.s32 %s2860_s17, %s3638_s1 }
  0xb9   : > { %p3587_p0 = scmp.eq.s32.totalorder %s2868_s19, 0  ;;  %p44_p8 = scmp.ge.s32.totalorder %s3640_s5, 2 }
  0xba   : > { %p3589_p11 = scmp.eq.s32.totalorder %s2989_s20, 0  ;;  %s77_s27 = sadd.s32 1, %s3585_s24 }
  0xbb   : > { %p3194_p5 = por %p3587_p0, %p58_p12  ;;  %p268_p10 = scmp.eq.s32.totalorder %s2989_s20, 3 }
  0xbc   : > { %p3203_p4 = por %p3589_p11, %p64_p1  ;;  %s3642_s5 = smov (%p44_p8, %s3640_s5), 0 }
  0xbd   : > { %3591 = sst [smem:[#allocation32_spill]] %s3642_s5  ;;  %p3211_p13 = por %p268_p10, %p58_p12 }
  0xbe   : > { %s3590_s30 = scalar_select %p3203_p4, 1, 0 }
  0xbf   : > { %s3592_s23 = scalar_select %p3211_p13, 1, 0 }
  0xc0   : > { %p274_p2 = scmp.eq.s32.totalorder %s2113_s22, 3  ;;  %s46_s25 = ssub.s32 %s2864_s18, %s3642_s5 }
  0xc1   : > { %3593 = sst [smem:[#allocation33_spill]] %s3592_s23  ;;  %s352_s26 = sand.u32 1, %s2848_s14  }
  0xc2   : > { %s48_s0 = sor.u32 %s47_s11, %s46_s25  ;;  %p75_p3 = scmp.eq.s32.totalorder %s46_s25, 0 }
  0xc3   : > { %s3594_s29 = sld [smem:[#allocation30_spill]]  ;;  %p49_p6 = scmp.eq.s32.totalorder %s48_s0, 0 }
  0xc4   : > { %p3221_p9 = por %p274_p2, %p64_p1  ;;  %s3644_s24 = smov (!%p75_p3, %s3585_s24), %s77_s27 }
  0xc5   : > { %s3229_s7 = scalar_select %p49_p6, %s2848_s14, %s51_s10  }
  0xc6   : > { %s3595_s3 = scalar_select %p3221_p9, 1, 0 }
  0xc7   : > { %s2120_s22 = sshll.u32 %s352_s26, 3  ;;  %s2121_s4 = sshll.u32 %s2864_s18, 1 }
  0xc8   : > { %s361_s6 = sadd.s32 %s2860_s17, %s2121_s4  ;;  %s356_s11 = scalar_lea.vmem [#allocation4], %s2120_s22 }
  0xc9   : > { %s365_s5 = sshll.u32 %s356_s11, 4  ;;  %s2122_s25 = sshll.u32 %s361_s6, 7  ;;  %s3235_s5 = int_to_ptr.vmem [resolvable:$true] %s365_s5 }
  0xca   : > { %s3596_s12 = sld [smem:[#allocation34_spill]]  ;;  %p3598_p7 = scmp.lt.s32.totalorder %s2868_s19, 4 }
  0xcb   : > { %s2674_s27 = scalar_lea.hbm %s3132_s16, 256  ;;  %p3600_p0 = scmp.ne.s32.totalorder %s3594_s29, 0 }
  0xcc   : > { %p3246_p12 = pnand %p3598_p7, %p3194_p5  ;;  %p2675_p1 = scmp.ne.s32.totalorder %s3132_s16, %s2674_s27 }
  0xcd   : > { %p3601_p8 = pneg %p3600_p0  ;;  %s2679_s22 = scalar_lea.hbm %s3510_s2, 512 }
  0xce   : > { %p2680_p2 = scmp.lt.u32.totalorder %s3132_s16, %s3510_s2  ;;  %p2681_p3 = scmp.lt.u32.totalorder %s2679_s22, %s2674_s27 }
  0xcf   : > { %p2677_p11 = pnand %p2675_p1, %p3601_p8  ;;  %p2683_p5 = scmp.lt.u32.totalorder %s2674_s27, %s3132_s16 }
  0xd0   : > { %s3597_s23 = smov %s3596_s12  ;;  %s3240_s20 = scalar_lea.hbm %s3596_s12, %s2122_s25 }
  0xd1   : > { %p2678_p10 = pneg %p2677_p11  ;;  %p2682_p6 = por %p2681_p3, %p2680_p2 }
  0xd3   : > { %p2684_p7 = por %p2683_p5, %p2682_p6 }
  0xd5   : > { %p2685_p9 = pnand %p2684_p7, %p2678_p10 }
  0xd7   : > { %2688 = shalt.err (!%p2685_p9)
}
  0xd8   : > { %s2689_s12 = scalar_lea.vmem %s3135_s8, 256  ;;  %s2877_s21 = smov [#allocation9]  }
  0xd9   : > { %p2690_p1 = scmp.ne.s32.totalorder %s3135_s8, %s2689_s12  ;;  %s2694_s25 = sshll.u32 %s2877_s21, 4  ;;  %s2695_s25 = int_to_ptr.vmem [resolvable:$false] %s2694_s25 }
  0xda   : > { %s2696_s0 = scalar_lea.vmem %s2695_s25, 512  ;;  %p2697_p4 = scmp.lt.s32.totalorder %s3135_s8, %s2695_s25 }
  0xdb   : > { %p2692_p11 = pnand %p2690_p1, %p3601_p8  ;;  %p2698_p2 = scmp.lt.s32.totalorder %s2696_s0, %s2689_s12 }
  0xdd   : > { %p2693_p13 = pneg %p2692_p11  ;;  %p2699_p3 = por %p2698_p2, %p2697_p4 }
  0xdf   : > { %p2700_p6 = pnand %p2699_p3, %p2693_p13 }
  0xe1   : > { %2703 = shalt.err (!%p2700_p6)
}
  0xe2   : > { %2401 = dma.hbm_to_vmem [thread:$0]  (!%p3600_p0), %s3132_s16, 256, %s3135_s8, %s3096_s15, %s3580_s28, %s3580_s28, %s3579_s9  }
  0xe3   : > { %s353_s27 = scalar_lea.sflag [#allocation5], %s352_s26  ;;  %s2704_s4 = scalar_lea.hbm %s3240_s20, 128 }
  0xe4   : > { %p2705_p4 = scmp.ne.s32.totalorder %s3240_s20, %s2704_s4  ;;  %p2706_p13 = pneg %p3246_p12 }
  0xe5   : > { %s2709_s22 = scalar_lea.hbm %s3597_s23, 512  ;;  %p2710_p5 = scmp.lt.u32.totalorder %s3240_s20, %s3597_s23 }
  0xe6   : > { %p2707_p9 = pnand %p2706_p13, %p2705_p4  ;;  %p2711_p7 = scmp.lt.u32.totalorder %s2709_s22, %s2704_s4 }
  0xe7   : > { %p2713_p1 = scmp.lt.u32.totalorder %s2704_s4, %s3240_s20 }
  0xe8   : > { %p2708_p10 = pneg %p2707_p9  ;;  %p2712_p0 = por %p2711_p7, %p2710_p5 }
  0xea   : > { %p2714_p8 = por %p2713_p1, %p2712_p0 }
  0xec   : > { %p2715_p11 = pnand %p2714_p8, %p2708_p10 }
  0xee   : > { %2718 = shalt.err (!%p2715_p11)
}
  0xef   : > { %s2719_s15 = scalar_lea.vmem %s3235_s5, 128  ;;  %s2878_s9 = smov [#allocation4]  }
  0xf0   : > { %p2720_p2 = scmp.ne.s32.totalorder %s3235_s5, %s2719_s15  ;;  %s2724_s28 = sshll.u32 %s2878_s9, 4  ;;  %s2725_s28 = int_to_ptr.vmem [resolvable:$false] %s2724_s28 }
  0xf1   : > { %s2726_s16 = scalar_lea.vmem %s2725_s28, 256  ;;  %p2727_p4 = scmp.lt.s32.totalorder %s3235_s5, %s2725_s28 }
  0xf2   : > { %p2722_p3 = pnand %p2720_p2, %p2706_p13  ;;  %p2728_p9 = scmp.lt.s32.totalorder %s2726_s16, %s2719_s15 }
  0xf4   : > { %p2723_p6 = pneg %p2722_p3  ;;  %p2729_p5 = por %p2728_p9, %p2727_p4 }
  0xf6   : > { %p2730_p7 = pnand %p2729_p5, %p2723_p6 }
  0xf8   : > { %2733 = shalt.err (!%p2730_p7)
}
  0xf9   : > { %2395 = dma.hbm_to_vmem [thread:$0]  (!%p3246_p12), %s3240_s20, 128, %s3235_s5, %s353_s27  }
  0xfa   : > { %s3602_s8 = sld [smem:[#allocation28_spill]] }
 0x100   : > { %p3603_p10 = scmp.ne.s32.totalorder %s3602_s8, 0 }
 0x101   : > { %s3307_s26 = sand.u32 (!%p3603_p10), 1, %s2844_s13   ;;  %p3604_p13 = scmp.ne.s32.totalorder (!%p3603_p10), %s3590_s30, 0 }
 0x102   : > { %416 = sbr.rel (%p3603_p10) target bundleno = 2422 (0x976), region = 56  ;;  %s2130_s12 = sshll.u32 (!%p3603_p10), %s3307_s26, 3 }
 0x103   : > { %s419_s21 = scalar_lea.sflag (!%p3603_p10), [#allocation5], %s3307_s26  ;;  %s3311_s25 = scalar_lea.vmem (!%p3603_p10), [#allocation4], %s2130_s12 }
 0x109   : > { %2807 = dma.done.wait (%p3604_p13), %s419_s21, 128  }
 0x10a   : > { %2809 = vsyncadd (%p3604_p13), %s419_s21, 4294967168  ;;  %s3605_s10 = sld [smem:[#allocation27_spill]]  ;;  %s3606_s20 = sld [smem:[#allocation22_spill]] }
 0x10b   : > { %s3607_s5 = sld [smem:[#allocation29_spill]] }
 0x110   : > { %s427_s0 = sand.u32 1, %s3605_s10   ;;  %s429_s27 = sand.u32 1, %s3606_s20  }
 0x111   : > { %s2131_s4 = sshll.u32 %s429_s27, 4  ;;  %s428_s29 = scalar_lea.sflag [#allocation8], %s427_s0 }
 0x112   : > { %s431_s6 = scalar_lea.vmem [#allocation7], %s2131_s4  ;;  %p3608_p12 = scmp.ne.s32.totalorder %s3607_s5, 0 }
 0x114   : > { %2811 = dma.done.wait (%p3608_p12), %s428_s29, 512  }
 0x115   : > { %2813 = vsyncadd (%p3608_p12), %s428_s29, 4294966784  ;;  %s440_s22 = scalar_lea.vmem [#allocation9], %s2131_s4  ;;  %p3609_p0 = scmp.eq.s32.totalorder %s3605_s10, 0 }
 0x117   : > { %2815 = dma.done.wait (%p3609_p0), [#allocation11], 1024   ;;  %p3610_p1 = pmov %p3609_p0 }
 0x118   : > { %p3611_p8 = pmov %p3609_p0 }
 0x119   : > { %2817 = vsyncadd (%p3610_p1), [#allocation11], 4294966272 }
 0x11a   : > { %2819 = dma.done.wait (%p3611_p8), [#allocation14], 1024   ;;  %p3612_p11 = pmov %p3609_p0 }
 0x11b   : > { %s3331_s30 = scalar_lea.vmem [#allocation16], %s2130_s12  ;;  %s3613_s11 = sld [smem:[#allocation25_spill]] }
 0x11c   : > { %2821 = vsyncadd (%p3612_p11), [#allocation14], 4294966272 }
 0x121   : > { %p2138_p2 = scmp.ne.s32.totalorder %s3613_s11, 0 }
 0x122   : > { %v505_v0 = vld [vmem:[%s431_s6] sm:$0xff] (!%p2138_p2)  ;;  %v506_v1 = vld [vmem:[%s431_s6 + $0x8] sm:$0xff] (!%p2138_p2)  ;;  %vm513_vm0 = vcmask (!%p2138_p2), 261120   ;;  %vm861_vm2 = vcmask (!%p2138_p2), 130048   ;;  %vm852_vm3 = vcmask (!%p2138_p2), 64512  }
 0x123   : > { %504 = sbr.rel (%p2138_p2) target bundleno = 660 (0x294), region = 88  ;;  %v509_v2 = vld [vmem:[#allocation12] sm:$0xff] (!%p2138_p2)  ;;  %v2319_v3 = vpack.c.bf16 (!%p2138_p2), %v506_v1, %v505_v0  ;;  %vm2320_vm1 = vmpackc.low (!%p2138_p2), %vm513_vm0, %vm513_vm0  ;;  %v508_v5 = vld [vmem:[%s440_s22 + $0x8] sm:$0xff] (!%p2138_p2) }
 0x124   : > { %2236 = vmatprep.mubr.msk.f32.mxu0 (!%p2138_p2), %vm513_vm0, %v509_v2  ;;  %v507_v4 = vld [vmem:[%s440_s22] sm:$0xff] (!%p2138_p2)  ;;  %v510_v8 = vld [vmem:[#allocation12 + $0x8] sm:$0xff] (!%p2138_p2)  ;;  %v512_v12 = vld [vmem:[#allocation12 + $0x18] sm:$0xff] (!%p2138_p2) }
 0x125   : > { %2321 = vmatprep.subr.msk.bf16.mxu0 (!%p2138_p2), %vm2320_vm1, %v2319_v3  ;;  %v2325_v6 = vpack.c.bf16 (!%p2138_p2), %v508_v5, %v507_v4  ;;  %v617_v7 = vld [vmem:[#allocation13] sm:$0xff] (!%p2138_p2)  ;;  %v511_v9 = vld [vmem:[#allocation12 + $0x10] sm:$0xff] (!%p2138_p2)  ;;  %v618_v10 = vld [vmem:[#allocation13 + $0x8] sm:$0xff] (!%p2138_p2) }
 0x126   : > { %2324 = vmatpush3.bf16.xpose.msk.msra.mxu0 (!%p2138_p2), %vm2320_vm1, %v2319_v3  ;;  %2246 = vmatprep.mubr.msk.f32.mxu1 (!%p2138_p2), %vm513_vm0, %v617_v7  ;;  %v619_v11 = vld [vmem:[#allocation13 + $0x10] sm:$0xff] (!%p2138_p2)  ;;  %v620_v13 = vld [vmem:[#allocation13 + $0x18] sm:$0xff] (!%p2138_p2) }
 0x127   : > { %2327 = vmatprep.subr.msk.bf16.mxu1 (!%p2138_p2), %vm2320_vm1, %v2325_v6 }
 0x128   : > { %2330 = vmatpush3.bf16.xpose.msk.msra.mxu1 (!%p2138_p2), %vm2320_vm1, %v2325_v6 }
 0x12d   : > { %2237 = vmatmul.mubr.msk.f32.vlgmr.msra.gmra.mrb[0].mxu0 %vm513_vm0, %v510_v8 }
 0x12e   : > { %2239 = vmatprep.mubr.msk.f32.mxu0 %vm513_vm0, %v511_v9 }
 0x12f   : > { %2247 = vmatmul.mubr.msk.f32.vlgmr.msra.gmra.mrb[0].mxu1 %vm513_vm0, %v618_v10 }
 0x130   : > { %2249 = vmatprep.mubr.msk.f32.mxu1 %vm513_vm0, %v619_v11 }
 0x131   : > { %2240 = vmatmul.mubr.msk.f32.gmra.mrb[2].mxu0 %vm513_vm0, %v512_v12 }
 0x133   : > { %2250 = vmatmul.mubr.msk.f32.gmra.mrb[2].mxu1 %vm513_vm0, %v620_v13 }
 0x200   : > { %v2238_v14 = vpop.f32.mrb[0].mxu0 }
 0x201   : > { %v598_v15 = vpop.f32.mrb[1].mxu0 }
 0x202   : > { %724 = vxpose.xlu0.b32.start.end [1/1] (short) (narrow) %v598_v15, 16  ;;  %v2248_v18 = vpop.f32.mrb[0].mxu1 }
 0x203   : > { %863 = vst.msk [vmem:[#allocation3 + $0x8] sm:$0xff] %vm861_vm2, %v2248_v18  ;;  %v705_v19 = vpop.f32.mrb[1].mxu1 }
 0x204   : > { %v2241_v16 = vpop.f32.mrb[2].mxu0  ;;  %862 = vst.msk [vmem:[#allocation3] sm:$0xff] %vm861_vm2, %v705_v19 }
 0x205   : > { %v608_v17 = vpop.f32.mrb[3].mxu0 }
 0x206   : > { %788 = vxpose.xlu1.b32.start.end [1/1] (short) (narrow) %v608_v17, 16  ;;  %v2251_v20 = vpop.f32.mrb[2].mxu1 }
 0x207   : > { %756 = vxpose.xlu0.b32.start.end [1/1] (short) (narrow) %v2238_v14, 16  ;;  %865 = vst.msk [vmem:[#allocation3 + $0x18] sm:$0xff] %vm861_vm2, %v2251_v20  ;;  %v715_v21 = vpop.f32.mrb[3].mxu1 }
 0x208   : > { %864 = vst.msk [vmem:[#allocation3 + $0x10] sm:$0xff] %vm861_vm2, %v715_v21 }
 0x20b   : > { %820 = vxpose.xlu1.b32.start.end [1/1] (short) (narrow) %v2241_v16, 16 }
 0x282   : > { %v740_v22 = vpop.trf.xlu0 }
 0x283   : > { %853 = vst.msk [vmem:[#allocation2] sm:$0xff] %vm852_vm3, %v740_v22 }
 0x286   : > { %v804_v23 = vpop.trf.xlu1  ;;  %v741_v24 = vpop.trf.xlu0 }
 0x287   : > { %857 = vst.msk [vmem:[#allocation2 + $0x20] sm:$0xff] %vm852_vm3, %v804_v23  ;;  %854 = vst.msk [vmem:[#allocation2 + $0x8] sm:$0xff] %vm852_vm3, %v741_v24 }
 0x28a   : > { %v805_v25 = vpop.trf.xlu1  ;;  %v772_v26 = vpop.trf.xlu0 }
 0x28b   : > { %858 = vst.msk [vmem:[#allocation2 + $0x28] sm:$0xff] %vm852_vm3, %v805_v25  ;;  %855 = vst.msk [vmem:[#allocation2 + $0x10] sm:$0xff] %vm852_vm3, %v772_v26 }
 0x28e   : > { %v836_v27 = vpop.trf.xlu1  ;;  %v773_v28 = vpop.trf.xlu0 }
 0x28f   : > { %859 = vst.msk [vmem:[#allocation2 + $0x30] sm:$0xff] %vm852_vm3, %v836_v27  ;;  %856 = vst.msk [vmem:[#allocation2 + $0x18] sm:$0xff] %vm852_vm3, %v773_v28 }
 0x292   : > { %v837_v29 = vpop.trf.xlu1 }
 0x293   : > { %860 = vst.msk [vmem:[#allocation2 + $0x38] sm:$0xff] %vm852_vm3, %v837_v29 }
 0x294 PF: > { %v3353_v30 = vld [vmem:[%s3311_s25] sm:$0xff]  ;;  %vm871_vm4 = vcmask 261120   ;;  %v867_v31 = vld [vmem:[#allocation10] sm:$0xff]  ;;  %v868_v32 = vld [vmem:[#allocation10 + $0x8] sm:$0xff]  ;;  %vm1108_vm5 = vcmask 64512   ;;  %v2879_v38 = vmov 0.0|0.0  }
 0x295   : > { %2252 = vmatprep.subr.msk.mxu0 %vm871_vm4, %v3353_v30  ;;  %2254 = vmatprep.mubr.msk.f32.mxu0 %vm871_vm4, %v867_v31  ;;  %v869_v33 = vld [vmem:[#allocation10 + $0x10] sm:$0xff]  ;;  %v870_v34 = vld [vmem:[#allocation10 + $0x18] sm:$0xff]  ;;  %vm3366_vm6 = vmpackc.low %vm1108_vm5, %vm1108_vm5  ;;  %vm2880_vm7 = vmmov 0   ;;  %v2881_v43 = vmov 0.0   ;;  %vm1425_vm8 = vcmask 130048   ;;  %s3616_s1 = sld [smem:[#allocation26_spill]] }
 0x296   : > { %2253 = vmatpush3.xpose.msk.msra.mxu0 %vm871_vm4, %v3353_v30  ;;  %v1100_v35 = vld [vmem:[#allocation2] sm:$0xff]  ;;  %v1101_v36 = vld [vmem:[#allocation2 + $0x8] sm:$0xff]  ;;  %2339 = vmatprep.subr.bf16.mxu1 %v2879_v38  ;;  %v1102_v48 = vld [vmem:[#allocation2 + $0x10] sm:$0xff]  ;;  %s3617_s15 = sld [smem:[#allocation25_spill]]  ;;  %s3618_s28 = sld [smem:[#allocation33_spill]] }
 0x297   : > { %v1104_v37 = vld [vmem:[#allocation2 + $0x20] sm:$0xff]  ;;  %2331 = vmatprep.subr.bf16.mxu0 %v2879_v38  ;;  %v2332_v39 = vpack.c.bf16 %v1101_v36, %v1100_v35  ;;  %v1105_v41 = vld [vmem:[#allocation2 + $0x28] sm:$0xff]  ;;  %2278 = vmatprep.mubr.msk.f32.mxu1 %vm2880_vm7, %v2881_v43  ;;  %v1103_v49 = vld [vmem:[#allocation2 + $0x18] sm:$0xff]  ;;  %s3619_s21 = sld [smem:[#allocation40_spill]]  ;;  %s3620_s20 = sld [smem:[#allocation41_spill]] }
 0x298   : > { %v2340_v42 = vpack.c.bf16 %v1105_v41, %v1104_v37  ;;  %v2336_v50 = vpack.c.bf16 %v1103_v49, %v1102_v48  ;;  %v1106_v52 = vld [vmem:[#allocation2 + $0x30] sm:$0xff]  ;;  %v1471_v40 = vld [vmem:[#allocation3 + $0x8] sm:$0xff]  ;;  %vm2349_vm9 = vmpackc.low %vm871_vm4, %vm871_vm4  ;;  %s1946_s0 = sshll.u32 %s3331_s30, 4  ;;  %s3621_s29 = sld [smem:[#allocation42_spill]]  ;;  %s3445_s0 = int_to_ptr.vmem [resolvable:$true] %s1946_s0 }
 0x299   : > { %2255 = vmatmul.mubr.msk.f32.vlgmr.msra.gmra.mrb[0].mxu0 %vm871_vm4, %v868_v32  ;;  %v1470_v32 = vld [vmem:[#allocation3] sm:$0xff]  ;;  %v1472_v36 = vld [vmem:[#allocation3 + $0x10] sm:$0xff]  ;;  %v1813_v49 = vld [vmem:[#allocation15 + $0x18] sm:$0xff]  ;;  %s1931_s22 = scalar_lea.sflag [#allocation6], %s3307_s26  ;;  %s2734_s11 = scalar_lea.vmem %s3445_s0, 128 }
 0x29a   : > { %2257 = vmatprep.mubr.msk.f32.mxu0 %vm871_vm4, %v869_v33  ;;  %2334 = vmatpush3.bf16.xpose.msk.msra.mxu0 %vm3366_vm6, %v2332_v39  ;;  %v1107_v53 = vld [vmem:[#allocation2 + $0x38] sm:$0xff]  ;;  %v1812_v48 = vld [vmem:[#allocation15 + $0x10] sm:$0xff]  ;;  %p2735_p3 = scmp.ne.s32.totalorder %s3445_s0, %s2734_s11 }
 0x29b   : > { %2342 = vmatpush3.bf16.xpose.msk.msra.mxu1 %vm3366_vm6, %v2340_v42  ;;  %2335 = vmatprep.subr.bf16.mxu0 %v2879_v38  ;;  %v2344_v56 = vpack.c.bf16 %v1107_v53, %v1106_v52  ;;  %s2184_s9 = sshll.u32 %s3616_s1, 1  ;;  %s2882_s1 = smov [#allocation16]  }
 0x29c   : > { %2288 = vmatprep.subr.mxu1 %v2881_v43  ;;  %s1942_s16 = sadd.s32 %s3617_s15, %s2184_s9  ;;  %p3622_p6 = scmp.ne.s32.totalorder %s3618_s28, 0 }
 0x29d   : > { %2258 = vmatmul.mubr.msk.f32.gmra.mrb[2].mxu0 %vm871_vm4, %v870_v34  ;;  %s2185_s5 = sshll.u32 %s1942_s16, 7  ;;  %s2738_s15 = sshll.u32 %s2882_s1, 4  ;;  %s2739_s15 = int_to_ptr.vmem [resolvable:$false] %s2738_s15 }
 0x29e   : > { %2264 = vmatprep.mubr.msk.f32.mxu0 %vm2880_vm7, %v2881_v43  ;;  %s3443_s6 = scalar_lea.hbm %s3621_s29, %s2185_s5  ;;  %p2736_p4 = pnand %p2735_p3, %p3622_p6 }
 0x29f   : > { %s2740_s9 = scalar_lea.vmem %s2739_s15, 256  ;;  %p2741_p5 = scmp.lt.s32.totalorder %s3445_s0, %s2739_s15 }
 0x2a0   : > { %p2737_p9 = pneg %p2736_p4  ;;  %p2742_p7 = scmp.lt.s32.totalorder %s2740_s9, %s2734_s11 }
 0x2a2   : > { %p2743_p10 = por %p2742_p7, %p2741_p5 }
 0x2a4   : > { %p2744_p13 = pnand %p2743_p10, %p2737_p9 }
 0x36c   : > { %v2256_v44 = vpop.f32.mrb[0].mxu0 }
 0x36d   : > { %v953_v45 = vpop.f32.mrb[1].mxu0 }
 0x36e   : > { %972 = vxpose.xlu0.b32.start.end [1/1] (short) (narrow) %v953_v45, 8  ;;  %v1810_v45 = vld [vmem:[#allocation15] sm:$0xff] }
 0x370   : > { %v2259_v46 = vpop.f32.mrb[2].mxu0 }
 0x371   : > { %v963_v47 = vpop.f32.mrb[3].mxu0 }
 0x372   : > { %1004 = vxpose.xlu0.b32.start.end [1/1] (short) (narrow) %v2256_v44, 8  ;;  %1036 = vxpose.xlu1.b32.start.end [1/1] (short) (narrow) %v963_v47, 8  ;;  %v1473_v44 = vld [vmem:[#allocation3 + $0x18] sm:$0xff] }
 0x376   : > { %1068 = vxpose.xlu1.b32.start.end [1/1] (short) (narrow) %v2259_v46, 8  ;;  %v1811_v46 = vld [vmem:[#allocation15 + $0x8] sm:$0xff] }
 0x377   : > { %v2348_v47 = vpack.c.bf16 %v1811_v46, %v1810_v45 }
 0x3ee   : > { %v988_v51 = vpop.trf.xlu0 }
 0x3ef   : > { %2265 = vmatmul.mubr.msk.f32.vlgmr.msra.gmra.mrb[4].mxu0 %vm1108_vm5, %v988_v51 }
 0x3f0   : > { %2338 = vmatpush3.bf16.xpose.msk.msra.mxu0 %vm3366_vm6, %v2336_v50  ;;  %2271 = vmatprep.mubr.msk.f32.mxu0 %vm2880_vm7, %v2881_v43  ;;  %v2352_v50 = vpack.c.bf16 %v1813_v49, %v1812_v48 }
 0x3f1   : > { %2343 = vmatprep.subr.bf16.mxu0 %v2879_v38 }
 0x3f2   : > { %v1052_v54 = vpop.trf.xlu1  ;;  %v1020_v55 = vpop.trf.xlu0 }
 0x3f3   : > { %2279 = vmatmul.mubr.msk.f32.vlgmr.msra.gmra.mrb[0].mxu1 %vm1108_vm5, %v1052_v54 }
 0x3f4   : > { %2290 = vmatprep.mubr.msk.f32.mxu1 %vm2880_vm7, %v2881_v43 }
 0x3f6   : > { %v1084_v57 = vpop.trf.xlu1 }
 0x3f7   : > { %2272 = vmatmul.mubr.msk.f32.vlgmr.msra.gmra.mrb[6].mxu0 %vm1108_vm5, %v1020_v55 }
 0x3f8   : > { %2346 = vmatpush3.bf16.xpose.msk.msra.mxu0 %vm3366_vm6, %v2344_v56  ;;  %2285 = vmatprep.mubr.msk.f32.mxu0 %vm2880_vm7, %v2881_v43 }
 0x3f9   : > { %2293 = vmatprep.subr.mxu0 %v2881_v43 }
 0x3ff   : > { %2286 = vmatmul.mubr.msk.f32.vlgmr.msra.gmra.mrb[8].mxu0 %vm1108_vm5, %v1084_v57 }
 0x400   : > { %2295 = vmatprep.mubr.msk.f32.mxu0 %vm2880_vm7, %v2881_v43 }
 0x4c2   : > { %v1184_v58 = vpop.f32.mrb[4].mxu0 }
 0x4c3   : > { %v2266_v59 = vpop.f32.mrb[5].mxu0  ;;  %v1426_v60 = vsel %vm1425_vm8, %v1184_v58, -inf }
 0x4c4   : > { %1427 = vmax.xlane.f32.xlu0 %v1426_v60 }
 0x4c6   : > { %v1342_v61 = vpop.f32.mrb[0].mxu1 }
 0x4c7   : > { %v2280_v62 = vpop.f32.mrb[1].mxu1  ;;  %v1432_v63 = vsel %vm1425_vm8, %v1342_v61, -inf }
 0x4c8   : > { %1433 = vmax.xlane.f32.xlu1 %v1432_v63 }
 0x4ca   : > { %v1263_v0 = vpop.f32.mrb[6].mxu0 }
 0x4cb   : > { %v2273_v1 = vpop.f32.mrb[7].mxu0  ;;  %v1429_v2 = vsel %vm1425_vm8, %v1263_v0, -inf }
 0x4cc   : > { %1430 = vmax.xlane.f32.xlu1 %v1429_v2 }
 0x4d2   : > { %v1421_v3 = vpop.f32.mrb[8].mxu0 }
 0x4d3   : > { %v2287_v4 = vpop.f32.mrb[9].mxu0  ;;  %v1435_v5 = vsel %vm1425_vm8, %v1421_v3, -inf }
 0x4d4   : > { %1436 = vmax.xlane.f32.xlu1 %v1435_v5 }
 0x551   : > { %v1428_v6 = vpop.xlane.xlu0 %1427 }
 0x552   : > { %v1438_v7 = vsub.f32 %v1184_v58, %v1428_v6  ;;  %v2181_v6 = vld [vmem:[%s3619_s21] ss:$0 sm:$0xff] }
 0x554   : > { %v1442_v8 = vmul.f32 1.442695, %v1438_v7 }
 0x555   : > { %v1434_v9 = vpop.xlane.xlu1 %1433 }
 0x556   : > { %2514 = vpow2.f32 %v1442_v8  ;;  %v1440_v10 = vsub.f32 %v1342_v61, %v1434_v9  ;;  %v2182_v8 = vld [vmem:[%s3620_s20] ss:$0 sm:$0xff] }
 0x558   : > { %v1446_v11 = vmul.f32 1.442695, %v1440_v10 }
 0x559   : > { %v1431_v12 = vpop.xlane.xlu1 %1430 }
 0x55a   : > { %2516 = vpow2.f32 %v1446_v11  ;;  %v1439_v13 = vsub.f32 %v1263_v0, %v1431_v12 }
 0x55c   : > { %v1444_v14 = vmul.f32 1.442695, %v1439_v13 }
 0x55e   : > { %2518 = vpow2.f32 %v1444_v14 }
 0x560   : > { %v2515_v15 = vpop.eup %2514 }
 0x561   : > { %v1437_v16 = vpop.xlane.xlu1 %1436  ;;  %v1450_v17 = vsel %vm1425_vm8, %v2515_v15, 0.0 }
 0x562   : > { %v1441_v18 = vsub.f32 %v1421_v3, %v1437_v16  ;;  %1451 = vadd.xlane.f32.xlu0 %v1450_v17 }
 0x564   : > { %v2517_v19 = vpop.eup %2516  ;;  %v1448_v20 = vmul.f32 1.442695, %v1441_v18 }
 0x565   : > { %v1456_v21 = vsel %vm1425_vm8, %v2517_v19, 0.0 }
 0x566   : > { %2520 = vpow2.f32 %v1448_v20  ;;  %1457 = vadd.xlane.f32.xlu0 %v1456_v21 }
 0x568   : > { %v2519_v22 = vpop.eup %2518 }
 0x569   : > { %v1453_v23 = vsel %vm1425_vm8, %v2519_v22, 0.0 }
 0x56a   : > { %1454 = vadd.xlane.f32.xlu1 %v1453_v23 }
 0x570   : > { %v2521_v24 = vpop.eup %2520 }
 0x571   : > { %v1459_v25 = vsel %vm1425_vm8, %v2521_v24, 0.0 }
 0x572   : > { %1460 = vadd.xlane.f32.xlu1 %v1459_v25 }
 0x5ef   : > { %v1452_v26 = vpop.xlane.xlu0 %1451 }
 0x5f0   : > { %2522 = vrcp.f32 %v1452_v26 }
 0x5f3   : > { %v1458_v27 = vpop.xlane.xlu0 %1457 }
 0x5f4   : > { %2524 = vrcp.f32 %v1458_v27 }
 0x5f7   : > { %v1455_v28 = vpop.xlane.xlu1 %1454 }
 0x5f8   : > { %2526 = vrcp.f32 %v1455_v28 }
 0x5fa   : > { %v2523_v29 = vpop.eup %2522 }
 0x5fb   : > { %v1466_v31 = vmul.f32 %v2523_v29, %v2515_v15 }
 0x5fd   : > { %2289 = vmatpush3.xpose.msk.msra.mxu1 %vm1425_vm8, %v1466_v31 }
 0x5fe   : > { %v2525_v33 = vpop.eup %2524  ;;  %2298 = vmatprep.subr.mxu1 %v2881_v43 }
 0x5ff   : > { %v1468_v34 = vmul.f32 %v2525_v33, %v2517_v19  ;;  %v1461_v35 = vpop.xlane.xlu1 %1460 }
 0x600   : > { %2528 = vrcp.f32 %v1461_v35  ;;  %2291 = vmatmul.mubr.msk.f32.vlgmr.msra.gmra.mrb[2].mxu1 %vm1425_vm8, %v1470_v32 }
 0x601   : > { %2299 = vmatpush3.xpose.msk.msra.mxu1 %vm1425_vm8, %v1468_v34  ;;  %2300 = vmatprep.mubr.msk.f32.mxu1 %vm2880_vm7, %v2881_v43 }
 0x602   : > { %v2527_v37 = vpop.eup %2526  ;;  %2347 = vmatprep.subr.bf16.mxu1 %v2879_v38 }
 0x603   : > { %v1467_v39 = vmul.f32 %v2527_v37, %v2519_v22 }
 0x604   : > { %2301 = vmatmul.mubr.msk.f32.vlgmr.msra.gmra.mrb[4].mxu1 %vm1425_vm8, %v1472_v36 }
 0x605   : > { %2294 = vmatpush3.xpose.msk.msra.mxu0 %vm1425_vm8, %v1467_v39  ;;  %2316 = vmatprep.mubr.msk.f32.mxu1 %vm2880_vm7, %v2881_v43 }
 0x606   : > { %2303 = vmatprep.subr.mxu0 %v2881_v43  ;;  %2350 = vmatpush3.bf16.xpose.msk.msra.mxu1 %vm2349_vm9, %v2348_v47 }
 0x607   : > { %2351 = vmatprep.subr.bf16.mxu1 %v2879_v38 }
 0x608   : > { %2296 = vmatmul.mubr.msk.f32.vlgmr.msra.gmra.mrb[10].mxu0 %vm1425_vm8, %v1471_v40 }
 0x609   : > { %2305 = vmatprep.mubr.msk.f32.mxu0 %vm2880_vm7, %v2881_v43 }
 0x60a   : > { %v2529_v41 = vpop.eup %2528 }
 0x60b   : > { %v1469_v42 = vmul.f32 %v2529_v41, %v2521_v24 }
 0x60d   : > { %2304 = vmatpush3.xpose.msk.msra.mxu0 %vm1425_vm8, %v1469_v42 }
 0x60e   : > { %2354 = vmatpush3.bf16.xpose.msk.msra.mxu1 %vm2349_vm9, %v2352_v50 }
 0x610   : > { %2306 = vmatmul.mubr.msk.f32.vlgmr.msra.gmra.mrb[12].mxu0 %vm1425_vm8, %v1473_v44 }
 0x6d3   : > { %v1546_v43 = vpop.f32.mrb[2].mxu1 }
 0x6d4   : > { %1778 = vxpose.xlu0.b32.start [1/4] (short) (narrow) %v1546_v43, 8  ;;  %v2292_v51 = vpop.f32.mrb[3].mxu1 }
 0x6d7   : > { %v1698_v52 = vpop.f32.mrb[4].mxu1 }
 0x6d8   : > { %v2302_v53 = vpop.f32.mrb[5].mxu1 }
 0x6db   : > { %v1622_v54 = vpop.f32.mrb[10].mxu0 }
 0x6dc   : > { %1779 = vxpose.xlu0.b32.cont [2/4] (short) (narrow) %v1622_v54, 8  ;;  %v2297_v55 = vpop.f32.mrb[11].mxu0 }
 0x6e0   : > { %1780 = vxpose.xlu0.b32.cont [3/4] (short) (narrow) %v1698_v52, 8 }
 0x6e3   : > { %v1774_v56 = vpop.f32.mrb[12].mxu0 }
 0x6e4   : > { %1781 = vxpose.xlu0.b32.end [4/4] (short) (narrow) %v1774_v56, 8  ;;  %v2307_v57 = vpop.f32.mrb[13].mxu0 }
 0x758   : > { %v1794_v58 = vpop.trf.xlu0 }
 0x759   : > { %2317 = vmatmul.mubr.msk.f32.vlgmr.msra.gmra.mrb[6].mxu1 %vm871_vm4, %v1794_v58 }
 0x82c   : > { %v1895_v38 = vpop.f32.mrb[6].mxu1 }
 0x82d   : > { %v1896_v59 = vadd.f32 %v1895_v38, %v3353_v30  ;;  %v2318_v60 = vpop.f32.mrb[7].mxu1 }
 0x82f   : > { %v1899_v61 = vsel %vm871_vm4, %v1896_v59, 0.0 }
 0x830   : > { %1900 = vadd.xlane.f32.xlu1 %v1899_v61 }
 0x8bd   : > { %v1901_v62 = vpop.xlane.xlu1 %1900 }
 0x8be   : > { %v1903_v63 = vmul.f32 0.03125, %v1901_v62 }
 0x8c0   : > { %v1904_v0 = vsub.f32 %v1896_v59, %v1903_v63 }
 0x8c2   : > { %v1905_v1 = vmul.f32 %v1904_v0, %v1904_v0 }
 0x8c4   : > { %v1906_v2 = vsel %vm871_vm4, %v1905_v1, 0.0 }
 0x8c5   : > { %1907 = vadd.xlane.f32.xlu1 %v1906_v2 }
 0x952   : > { %v1908_v3 = vpop.xlane.xlu1 %1907 }
 0x953   : > { %v1909_v4 = vmul.f32 0.03125, %v1908_v3 }
 0x955   : > { %v1910_v5 = vadd.f32 1e-06, %v1909_v4 }
 0x957   : > { %2530 = vrsqrt.f32 %v1910_v5 }
 0x961   : > { %v2531_v30 = vpop.eup %2530 }
 0x962   : > { %v1912_v7 = vmul.f32 %v2531_v30, %v1904_v0 }
 0x964   : > { %v1920_v9 = vmul.f32 %v2181_v6, %v1912_v7 }
 0x966   : > { %v1928_v10 = vadd.f32 %v2182_v8, %v1920_v9 }
 0x968   : > { %1929 = vst.msk [vmem:[%s3331_s30] sm:$0xff] %vm871_vm4, %v1928_v10 }
 0x969   : > { %2747 = shalt.err (!%p2744_p13)
}
 0x96a   : > { %s2748_s26 = scalar_lea.hbm %s3443_s6, 128  ;;  %s2752_s8 = scalar_lea.hbm %s3621_s29, 512 }
 0x96b   : > { %p2749_p12 = scmp.ne.s32.totalorder %s3443_s6, %s2748_s26  ;;  %p2753_p8 = scmp.lt.u32.totalorder %s3443_s6, %s3621_s29 }
 0x96c   : > { %p2754_p11 = scmp.lt.u32.totalorder %s2752_s8, %s2748_s26  ;;  %p2756_p3 = scmp.lt.u32.totalorder %s2748_s26, %s3443_s6 }
 0x96d   : > { %p2750_p0 = pnand %p2749_p12, %p3622_p6 }
 0x96e   : > { %p2755_p2 = por %p2754_p11, %p2753_p8 }
 0x96f   : > { %p2751_p1 = pneg %p2750_p0 }
 0x970   : > { %p2757_p4 = por %p2756_p3, %p2755_p2 }
 0x972   : > { %p2758_p9 = pnand %p2757_p4, %p2751_p1 }
 0x974   : > { %2761 = shalt.err (!%p2758_p9)
}
 0x975   : > { %2377 = dma.vmem_to_hbm [thread:$0]  (%p3622_p6), %s3445_s0, 128, %s3443_s6, %s1931_s22  }
 0x976 PF: > { %s3623_s25 = sld [smem:[#allocation24_spill]]  ;;  %p2415_p5 = scmp.ge.s32.totalorder %s2868_s19, 2 }
 0x977   : > { %p3624_p7 = scmp.ne.s32.totalorder %s3595_s3, 0 }
 0x979   : > { %p2403_p10 = pnand %p2415_p5, %p3624_p7 }
 0x97c   : > { %s1958_s10 = sand.u32 1, %s3623_s25  }
 0x97d   : > { %s1959_s20 = scalar_lea.sflag [#allocation6], %s1958_s10 }
 0x97e   : > { %2823 = dma.done.wait (!%p2403_p10), %s1959_s20, 128  }
 0x97f   : > { %2825 = vsyncadd (!%p2403_p10), %s1959_s20, 4294967168  ;;  %s30_s19 = sadd.s32 1, %s2868_s19   ;;  %s3625_s30 = sld [smem:[#allocation22_spill]] }
 0x980   : > { %p27_p13 = scmp.ge.s32.totalorder %s30_s19, 6   ;;  %s3626_s10 = sld [smem:[#allocation23_spill]] }
 0x981   : > { %s3627_s28 = sld [smem:[#allocation31_spill]]  ;;  %s3628_s5 = sld [smem:[#allocation32_spill]] }
 0x982   : > { %s3629_s11 = smov %s3644_s24  ;;  %s3630_s12 = smov %s2844_s13 }
 0x983   : > { %s3631_s13 = smov %s2848_s14  ;;  %s3632_s14 = smov %s3229_s7 }
 0x984   : > { %s3633_s15 = smov %s2860_s17  ;;  %s3634_s16 = smov %s2864_s18 }
 0x985   :  { %29 = sbr.rel (!%p27_p13) target bundleno = 23 (0x17), region = 145 }
 0x987   : > { %s3635_s17 = smov %s3627_s28  ;;  %s3636_s18 = smov %s3628_s5 }
 0x98c   :  { %1964 = vsyncpa [#allocation5], 1 }
 0x98d   :  { %1966 = vsyncpa [#allocation5 + $0x1], 1 }
 0x98e   :  { %1967 = vsyncpa [#allocation8], 1 }
 0x98f   :  { %1969 = vsyncpa [#allocation8 + $0x1], 1 }
 0x990   :  { %1970 = vsyncpa [#allocation11], 1 }
 0x991   :  { %1971 = vsyncpa [#allocation14], 1 }
 0x992   :  { %1972 = vsyncpa [#allocation6], 1 }
 0x993   :  { %1974 = vsyncpa [#allocation6 + $0x1], 1 }

</bundles_post_ra>
